<compile_context>
chip_gen: v6e
topology: v6e:2x2x1
jax: 0.10.0
libtpu: 0.0.40
codegen_flags: <defaults>
</compile_context>

<pallas_src>
import jax
import jax.numpy as jnp
from jax.experimental import pallas as pl
from jax.experimental.pallas import tpu as pltpu


# -----------------------------------------------------------------------------
# Encoder kernel: (pointwise conv -> ReLU -> global avg pool -> fc), one batch
# element per grid step.
# -----------------------------------------------------------------------------
def encoder_kernel(x_ref, wt_ref, bt_ref, wfc_ref, bfc_ref, o_ref):
    # x_ref: (1, HW, C); wt: (C, F); bt: (1, F); wfc: (F, E); bfc: (1, E)
    # o_ref: (1, 1, E)
    x = x_ref[0]                                                   # (HW, C)
    feat = jnp.dot(x, wt_ref[...], preferred_element_type=jnp.float32) + bt_ref[...]
    feat = jnp.maximum(feat, 0.0)                                  # ReLU (HW, F)
    pooled = jnp.mean(feat, axis=0, keepdims=True)                 # (1, F)
    o_ref[0] = (jnp.dot(pooled, wfc_ref[...],
                        preferred_element_type=jnp.float32)
                + bfc_ref[...])                                    # (1, E)


def encode_image(img, p):
    # img: (B, C, H, W) NCHW -> (B, 1, E)
    B, C, H, W = img.shape
    F_ = p["w_trunk_t"].shape[1]
    E = p["w_fc_t"].shape[1]
    x = jnp.transpose(img, (0, 2, 3, 1)).reshape(B, H * W, C)      # channels-last

    def full(shape):
        return pl.BlockSpec(shape, lambda b: (0,) * len(shape))

    return pl.pallas_call(
        encoder_kernel,
        out_shape=jax.ShapeDtypeStruct((B, 1, E), jnp.float32),
        grid=(B,),
        in_specs=[
            pl.BlockSpec((1, H * W, C), lambda b: (b, 0, 0)),
            full((C, F_)), full((1, F_)), full((F_, E)), full((1, E)),
        ],
        out_specs=pl.BlockSpec((1, 1, E), lambda b: (b, 0, 0)),
        compiler_params=pltpu.CompilerParams(
            dimension_semantics=("parallel",)),
    )(x, p["w_trunk_t"], p["b_trunk_r"], p["w_fc_t"], p["b_fc_r"])


# -----------------------------------------------------------------------------
# Decoder kernel: 2-layer LSTM (batch_first) fused with output Linear.
# One batch element per grid step.  PyTorch gate order: i, f, g, o.
# -----------------------------------------------------------------------------
def lstm_decoder_kernel(x_ref, wi1_ref, wh1_ref, b1_ref,
                        wi2_ref, wh2_ref, b2_ref,
                        wo_ref, bo_ref, out_ref):
    # x_ref: (1, T, E); wi*: (in, 4H); wh*: (H, 4H); b*: (1, 4H)
    # wo: (H, V); bo: (1, V); out_ref: (1, T, V)
    T = x_ref.shape[1]
    H = wh1_ref.shape[0]

    x = x_ref[0]                                                   # (T, E)
    wh1, wi2, wh2, b2 = wh1_ref[...], wi2_ref[...], wh2_ref[...], b2_ref[...]

    # Hoist the layer-1 input projection (+ bias) out of the recurrence:
    # one (T, E) @ (E, 4H) matmul instead of T small ones on the serial path.
    xg1 = jnp.dot(x, wi1_ref[...], preferred_element_type=jnp.float32) + b1_ref[...]

    def cell(gates, c):
        # 4H == 128 lanes: full-width sigmoid/tanh (2 EUP passes), then slice.
        sig = jax.nn.sigmoid(gates)
        th = jnp.tanh(gates)
        i = sig[:, 0 * H:1 * H]
        f = sig[:, 1 * H:2 * H]
        g = th[:, 2 * H:3 * H]
        o = sig[:, 3 * H:4 * H]
        c_new = f * c + i * g
        h_new = o * jnp.tanh(c_new)
        return h_new, c_new

    zeros = jnp.zeros((1, H), jnp.float32)
    h1, c1, h2, c2 = zeros, zeros, zeros, zeros
    h2_rows = []
    # Fully unrolled time loop (T is static and small): lets the scheduler
    # interleave MXU pushes / EUP transcendentals across adjacent steps.
    for t in range(T):
        g1 = xg1[t:t + 1, :] + jnp.dot(h1, wh1, preferred_element_type=jnp.float32)
        h1, c1 = cell(g1, c1)
        g2 = (jnp.dot(h1, wi2, preferred_element_type=jnp.float32)
              + jnp.dot(h2, wh2, preferred_element_type=jnp.float32) + b2)
        h2, c2 = cell(g2, c2)
        h2_rows.append(h2)

    # Single batched output projection + one contiguous store.
    h2_all = jnp.concatenate(h2_rows, axis=0)                      # (T, H)
    logits = (jnp.dot(h2_all, wo_ref[...], preferred_element_type=jnp.float32)
              + bo_ref[...])                                       # (T, V)
    out_ref[0] = logits.astype(out_ref.dtype)


def decode_sequence(x_in, p):
    # x_in: (B, T, E) -> (B, V, T) to match `.permute(0, 2, 1)` in PyTorch.
    B, T, E = x_in.shape
    H = p["w_hh1_t"].shape[0]
    V = p["w_out_t"].shape[1]

    def full(shape):
        return pl.BlockSpec(shape, lambda b: (0,) * len(shape))

    out_btv = pl.pallas_call(
        lstm_decoder_kernel,
        out_shape=jax.ShapeDtypeStruct((B, T, V), jnp.float32),
        grid=(B,),
        in_specs=[
            pl.BlockSpec((1, T, E), lambda b: (b, 0, 0)),
            full((E, 4 * H)), full((H, 4 * H)), full((1, 4 * H)),
            full((H, 4 * H)), full((H, 4 * H)), full((1, 4 * H)),
            full((H, V)), full((1, V)),
        ],
        out_specs=pl.BlockSpec((1, T, V), lambda b: (b, 0, 0)),
        compiler_params=pltpu.CompilerParams(
            dimension_semantics=("parallel",)),
    )(x_in,
      p["w_ih1_t"], p["w_hh1_t"], p["b1"],
      p["w_ih2_t"], p["w_hh2_t"], p["b2"],
      p["w_out_t"], p["b_out_r"])
    return jnp.transpose(out_btv, (0, 2, 1))                       # (B, V, T)


# -----------------------------------------------------------------------------
# Full forward (mirrors ImageCaptionLSTM.forward).  Wrap in jax.jit.
# -----------------------------------------------------------------------------
def batchnorm1d_unused(x_bet, gamma, beta, eps=1e-5):
    # x_bet: (B, E, T); training-mode BatchNorm1d over (batch, time) per channel.
    mean = x_bet.mean(axis=(0, 2), keepdims=True)
    var = x_bet.var(axis=(0, 2), keepdims=True)
    return ((x_bet - mean) / jnp.sqrt(var + eps)
            * gamma[None, :, None] + beta[None, :, None])


def forward(img, text, p):
    img_feat = encode_image(img, p)                                 # (B, 1, E)
    text_embedded = jnp.take(p["embedding"], text[:, :-1], axis=0)  # (B, L-1, E)
    x_input = jnp.concatenate([img_feat, text_embedded], axis=1)    # (B, T, E)
    # Computed but discarded, exactly like the original forward(); DCE'd under jit.
    _ = batchnorm1d_unused(jnp.transpose(x_input, (0, 2, 1)),
                           p["bn_gamma"], p["bn_beta"])
    return decode_sequence(x_input, p)                              # (B, V, T)


# -----------------------------------------------------------------------------
# Pure-JAX reference for validation (operates on raw PyTorch-layout params).
# -----------------------------------------------------------------------------
def reference_forward(img, text, p):
    B, C, H, W = img.shape
    x = jnp.transpose(img, (0, 2, 3, 1)).reshape(B, H * W, C)
    feat = jnp.maximum(jnp.einsum("bpc,fc->bpf", x, p["w_trunk"]) + p["b_trunk"], 0.0)
    img_feat = feat.mean(axis=1) @ p["w_fc"].T + p["b_fc"]
    emb = p["embedding"][text[:, :-1]]
    x_in = jnp.concatenate([img_feat[:, None, :], emb], axis=1)
    Bq, T, _ = x_in.shape
    Hh = p["w_hh1"].shape[1]

    def cell(x_t, h, c, wi, wh, bi, bh):
        g = x_t @ wi.T + h @ wh.T + bi + bh
        i, f, gg, o = jnp.split(g, 4, axis=-1)
        c_new = jax.nn.sigmoid(f) * c + jax.nn.sigmoid(i) * jnp.tanh(gg)
        h_new = jax.nn.sigmoid(o) * jnp.tanh(c_new)
        return h_new, c_new

    h1 = c1 = h2 = c2 = jnp.zeros((Bq, Hh), jnp.float32)
    outs = []
    for t in range(T):
        h1, c1 = cell(x_in[:, t], h1, c1, p["w_ih1"], p["w_hh1"], p["b_ih1"], p["b_hh1"])
        h2, c2 = cell(h1, h2, c2, p["w_ih2"], p["w_hh2"], p["b_ih2"], p["b_hh2"])
        outs.append(h2 @ p["w_out"].T + p["b_out"])
    dec = jnp.stack(outs, axis=1)                                   # (B, T, V)
    return jnp.transpose(dec, (0, 2, 1))                            # (B, V, T)


# -----------------------------------------------------------------------------
# Deterministic parameter init (synthetic weights; shapes follow the module)
# and one-time layout preparation for the kernels.
# -----------------------------------------------------------------------------
def init_params(key, C, F, E, H, V):
    ks = jax.random.split(key, 16)

    def u(k, shape, fan_in):
        bound = 1.0 / jnp.sqrt(jnp.float32(fan_in))
        return jax.random.uniform(k, shape, jnp.float32, -bound, bound)

    return {
        "w_trunk": u(ks[0], (F, C), C),      # synthetic frozen trunk (1x1 conv)
        "b_trunk": u(ks[1], (F,), C),
        "w_fc":    u(ks[2], (E, F), F),      # encoder.fc: Linear(F -> E)
        "b_fc":    u(ks[3], (E,), F),
        "embedding": jax.random.normal(ks[4], (V, E), jnp.float32),
        # LSTM layer 1 (input E) and layer 2 (input H), PyTorch gate order i,f,g,o
        "w_ih1": u(ks[5], (4 * H, E), H), "w_hh1": u(ks[6], (4 * H, H), H),
        "b_ih1": u(ks[7], (4 * H,), H),   "b_hh1": u(ks[8], (4 * H,), H),
        "w_ih2": u(ks[9], (4 * H, H), H), "w_hh2": u(ks[10], (4 * H, H), H),
        "b_ih2": u(ks[11], (4 * H,), H),  "b_hh2": u(ks[12], (4 * H,), H),
        "w_out": u(ks[13], (V, H), H),    "b_out": u(ks[14], (V,), H),
        "bn_gamma": jnp.ones((E,), jnp.float32),
        "bn_beta": jnp.zeros((E,), jnp.float32),
    }


def prepare_params(p):
    # Pre-transpose / pre-combine weights once (kernel-friendly layouts).
    return {
        "w_trunk_t": p["w_trunk"].T,                    # (C, F)
        "b_trunk_r": p["b_trunk"].reshape(1, -1),       # (1, F)
        "w_fc_t": p["w_fc"].T,                          # (F, E)
        "b_fc_r": p["b_fc"].reshape(1, -1),             # (1, E)
        "embedding": p["embedding"],
        "w_ih1_t": p["w_ih1"].T,                        # (E, 4H)
        "w_hh1_t": p["w_hh1"].T,                        # (H, 4H)
        "b1": (p["b_ih1"] + p["b_hh1"]).reshape(1, -1),
        "w_ih2_t": p["w_ih2"].T,                        # (H, 4H)
        "w_hh2_t": p["w_hh2"].T,                        # (H, 4H)
        "b2": (p["b_ih2"] + p["b_hh2"]).reshape(1, -1),
        "w_out_t": p["w_out"].T,                        # (H, V)
        "b_out_r": p["b_out"].reshape(1, -1),           # (1, V)
        "bn_gamma": p["bn_gamma"],
        "bn_beta": p["bn_beta"],
    }


if __name__ == "__main__":
    B, C, S = 2, 3, 16              # batch, image channels (RGB), spatial
    L = 8                           # caption length (decoder sees 1 + (L-1) = L steps)
    E, Hsz, V, F = 32, 32, 40, 64   # embedding, hidden, vocab, trunk feature dim

    key = jax.random.PRNGKey(0)
    k_param, k_img, k_txt = jax.random.split(key, 3)
    params = init_params(k_param, C, F, E, Hsz, V)
    kparams = prepare_params(params)

    img = jax.random.normal(k_img, (B, C, S, S), jnp.float32)
    text = jax.random.randint(k_txt, (B, L), 0, V, dtype=jnp.int32)

    fwd = jax.jit(forward)
    out = jax.block_until_ready(fwd(img, text, kparams))

    ref = reference_forward(img, text, params)
    assert out.shape == (B, V, L), out.shape
    assert bool(jnp.allclose(out, ref, atol=2e-2, rtol=2e-2)), "mismatch vs JAX reference"

    print("KERNEL_OK")
</pallas_src>

<mosaic_0001>
module attributes {stable_mosaic.version = 11 : i64} {
  func.func @encoder_kernel(%arg0: i32, %arg1: memref<1x256x3xf32, #tpu.memory_space<vmem>>, %arg2: memref<3x64xf32, #tpu.memory_space<vmem>>, %arg3: memref<1x64xf32, #tpu.memory_space<vmem>>, %arg4: memref<64x32xf32, #tpu.memory_space<vmem>>, %arg5: memref<1x32xf32, #tpu.memory_space<vmem>>, %arg6: memref<1x1x32xf32, #tpu.memory_space<vmem>>) attributes {dimension_semantics = [#tpu.dimension_semantics<parallel>], iteration_bounds = array<i64: 2>, scalar_prefetch = 0 : i64, scratch_operands = 0 : i64, tpu.core_type = #tpu.core_type<tc>, window_params = [{transform_indices = @transform_0, window_bounds = array<i64: 1, 256, 3>}, {pipeline_mode = #tpu.pipeline_mode<synchronous>, transform_indices = @transform_1, window_bounds = array<i64: 3, 64>}, {pipeline_mode = #tpu.pipeline_mode<synchronous>, transform_indices = @transform_2, window_bounds = array<i64: 1, 64>}, {pipeline_mode = #tpu.pipeline_mode<synchronous>, transform_indices = @transform_3, window_bounds = array<i64: 64, 32>}, {pipeline_mode = #tpu.pipeline_mode<synchronous>, transform_indices = @transform_4, window_bounds = array<i64: 1, 32>}, {transform_indices = @transform_5, window_bounds = array<i64: 1, 1, 32>}]} {
    %c0 = arith.constant 0 : index
    %c0_0 = arith.constant 0 : index
    %c0_1 = arith.constant 0 : index
    %0 = vector.load %arg1[%c0, %c0_0, %c0_1] : memref<1x256x3xf32, #tpu.memory_space<vmem>>, vector<1x256x3xf32>
    %1 = vector.shape_cast %0 : vector<1x256x3xf32> to vector<256x3xf32>
    %c0_2 = arith.constant 0 : index
    %c0_3 = arith.constant 0 : index
    %2 = vector.load %arg2[%c0_2, %c0_3] : memref<3x64xf32, #tpu.memory_space<vmem>>, vector<3x64xf32>
    %cst = arith.constant dense<0.000000e+00> : vector<256x64xf32>
    %3 = tpu.matmul %1, %2, %cst {dimension_numbers = #tpu.dot_dimension_numbers<[1], [0], [0], [1], [0, 0, 1, 1], [], []>} : vector<256x3xf32>, vector<3x64xf32>, vector<256x64xf32> -> vector<256x64xf32>
    %c0_4 = arith.constant 0 : index
    %c0_5 = arith.constant 0 : index
    %4 = vector.load %arg3[%c0_4, %c0_5] : memref<1x64xf32, #tpu.memory_space<vmem>>, vector<1x64xf32>
    %5 = vector.broadcast %4 : vector<1x64xf32> to vector<256x64xf32>
    %6 = arith.addf %3, %5 : vector<256x64xf32>
    %cst_6 = arith.constant 0.000000e+00 : f32
    %7 = vector.broadcast %cst_6 : f32 to vector<256x64xf32>
    %8 = arith.maximumf %6, %7 : vector<256x64xf32>
    %cst_7 = arith.constant dense<0.000000e+00> : vector<64xf32>
    %9 = vector.multi_reduction <add>, %8, %cst_7 [0] : vector<256x64xf32> to vector<64xf32>
    %10 = vector.shape_cast %9 : vector<64xf32> to vector<1x64xf32>
    %cst_8 = arith.constant 2.560000e+02 : f32
    %11 = vector.broadcast %cst_8 : f32 to vector<1x64xf32>
    %12 = arith.divf %10, %11 : vector<1x64xf32>
    %c0_9 = arith.constant 0 : index
    %c0_10 = arith.constant 0 : index
    %13 = vector.load %arg4[%c0_9, %c0_10] : memref<64x32xf32, #tpu.memory_space<vmem>>, vector<64x32xf32>
    %cst_11 = arith.constant dense<0.000000e+00> : vector<1x32xf32>
    %14 = tpu.matmul %12, %13, %cst_11 {dimension_numbers = #tpu.dot_dimension_numbers<[1], [0], [0], [1], [0, 0, 1, 1], [], []>} : vector<1x64xf32>, vector<64x32xf32>, vector<1x32xf32> -> vector<1x32xf32>
    %c0_12 = arith.constant 0 : index
    %c0_13 = arith.constant 0 : index
    %15 = vector.load %arg5[%c0_12, %c0_13] : memref<1x32xf32, #tpu.memory_space<vmem>>, vector<1x32xf32>
    %16 = arith.addf %14, %15 : vector<1x32xf32>
    %c0_14 = arith.constant 0 : index
    %c0_15 = arith.constant 0 : index
    %c0_16 = arith.constant 0 : index
    %17 = vector.load %arg6[%c0_14, %c0_15, %c0_16] : memref<1x1x32xf32, #tpu.memory_space<vmem>>, vector<1x1x32xf32>
    %18 = vector.shape_cast %17 : vector<1x1x32xf32> to vector<1x32xf32>
    %19 = vector.shape_cast %16 : vector<1x32xf32> to vector<1x1x32xf32>
    tpu.vector_store %arg6[%c0_14, %c0_15, %c0_16], %19 {strides = array<i32>} : memref<1x1x32xf32, #tpu.memory_space<vmem>>, vector<1x1x32xf32>,
    return
  }
  func.func @transform_0(%arg0: i32) -> (i32, i32, i32) {
    %c0_i32 = arith.constant 0 : i32
    %c0_i32_0 = arith.constant 0 : i32
    %c0_i32_1 = arith.constant 0 : i32
    return %arg0, %c0_i32, %c0_i32_0 : i32, i32, i32
  }
  func.func @transform_1(%arg0: i32) -> (i32, i32) {
    %c0_i32 = arith.constant 0 : i32
    %c0_i32_0 = arith.constant 0 : i32
    %c0_i32_1 = arith.constant 0 : i32
    return %c0_i32, %c0_i32_0 : i32, i32
  }
  func.func @transform_2(%arg0: i32) -> (i32, i32) {
    %c0_i32 = arith.constant 0 : i32
    %c0_i32_0 = arith.constant 0 : i32
    %c0_i32_1 = arith.constant 0 : i32
    return %c0_i32, %c0_i32_0 : i32, i32
  }
  func.func @transform_3(%arg0: i32) -> (i32, i32) {
    %c0_i32 = arith.constant 0 : i32
    %c0_i32_0 = arith.constant 0 : i32
    %c0_i32_1 = arith.constant 0 : i32
    return %c0_i32, %c0_i32_0 : i32, i32
  }
  func.func @transform_4(%arg0: i32) -> (i32, i32) {
    %c0_i32 = arith.constant 0 : i32
    %c0_i32_0 = arith.constant 0 : i32
    %c0_i32_1 = arith.constant 0 : i32
    return %c0_i32, %c0_i32_0 : i32, i32
  }
  func.func @transform_5(%arg0: i32) -> (i32, i32, i32) {
    %c0_i32 = arith.constant 0 : i32
    %c0_i32_0 = arith.constant 0 : i32
    %c0_i32_1 = arith.constant 0 : i32
    return %arg0, %c0_i32, %c0_i32_0 : i32, i32, i32
  }
}

module attributes {stable_mosaic.version = 11 : i64} {
  func.func @lstm_decoder_kernel(%arg0: i32, %arg1: memref<1x8x32xf32, #tpu.memory_space<vmem>>, %arg2: memref<32x128xf32, #tpu.memory_space<vmem>>, %arg3: memref<32x128xf32, #tpu.memory_space<vmem>>, %arg4: memref<1x128xf32, #tpu.memory_space<vmem>>, %arg5: memref<32x128xf32, #tpu.memory_space<vmem>>, %arg6: memref<32x128xf32, #tpu.memory_space<vmem>>, %arg7: memref<1x128xf32, #tpu.memory_space<vmem>>, %arg8: memref<32x40xf32, #tpu.memory_space<vmem>>, %arg9: memref<1x40xf32, #tpu.memory_space<vmem>>, %arg10: memref<1x8x40xf32, #tpu.memory_space<vmem>>) attributes {dimension_semantics = [#tpu.dimension_semantics<parallel>], iteration_bounds = array<i64: 2>, scalar_prefetch = 0 : i64, scratch_operands = 0 : i64, tpu.core_type = #tpu.core_type<tc>, window_params = [{transform_indices = @transform_0, window_bounds = array<i64: 1, 8, 32>}, {pipeline_mode = #tpu.pipeline_mode<synchronous>, transform_indices = @transform_1, window_bounds = array<i64: 32, 128>}, {pipeline_mode = #tpu.pipeline_mode<synchronous>, transform_indices = @transform_2, window_bounds = array<i64: 32, 128>}, {pipeline_mode = #tpu.pipeline_mode<synchronous>, transform_indices = @transform_3, window_bounds = array<i64: 1, 128>}, {pipeline_mode = #tpu.pipeline_mode<synchronous>, transform_indices = @transform_4, window_bounds = array<i64: 32, 128>}, {pipeline_mode = #tpu.pipeline_mode<synchronous>, transform_indices = @transform_5, window_bounds = array<i64: 32, 128>}, {pipeline_mode = #tpu.pipeline_mode<synchronous>, transform_indices = @transform_6, window_bounds = array<i64: 1, 128>}, {pipeline_mode = #tpu.pipeline_mode<synchronous>, transform_indices = @transform_7, window_bounds = array<i64: 32, 40>}, {pipeline_mode = #tpu.pipeline_mode<synchronous>, transform_indices = @transform_8, window_bounds = array<i64: 1, 40>}, {transform_indices = @transform_9, window_bounds = array<i64: 1, 8, 40>}]} {
    %c0 = arith.constant 0 : index
    %c0_0 = arith.constant 0 : index
    %c0_1 = arith.constant 0 : index
    %0 = vector.load %arg1[%c0, %c0_0, %c0_1] : memref<1x8x32xf32, #tpu.memory_space<vmem>>, vector<1x8x32xf32>
    %1 = vector.shape_cast %0 : vector<1x8x32xf32> to vector<8x32xf32>
    %c0_2 = arith.constant 0 : index
    %c0_3 = arith.constant 0 : index
    %2 = vector.load %arg3[%c0_2, %c0_3] : memref<32x128xf32, #tpu.memory_space<vmem>>, vector<32x128xf32>
    %c0_4 = arith.constant 0 : index
    %c0_5 = arith.constant 0 : index
    %3 = vector.load %arg5[%c0_4, %c0_5] : memref<32x128xf32, #tpu.memory_space<vmem>>, vector<32x128xf32>
    %c0_6 = arith.constant 0 : index
    %c0_7 = arith.constant 0 : index
    %4 = vector.load %arg6[%c0_6, %c0_7] : memref<32x128xf32, #tpu.memory_space<vmem>>, vector<32x128xf32>
    %c0_8 = arith.constant 0 : index
    %c0_9 = arith.constant 0 : index
    %5 = vector.load %arg7[%c0_8, %c0_9] : memref<1x128xf32, #tpu.memory_space<vmem>>, vector<1x128xf32>
    %c0_10 = arith.constant 0 : index
    %c0_11 = arith.constant 0 : index
    %6 = vector.load %arg2[%c0_10, %c0_11] : memref<32x128xf32, #tpu.memory_space<vmem>>, vector<32x128xf32>
    %cst = arith.constant dense<0.000000e+00> : vector<8x128xf32>
    %7 = tpu.matmul %1, %6, %cst {dimension_numbers = #tpu.dot_dimension_numbers<[1], [0], [0], [1], [0, 0, 1, 1], [], []>} : vector<8x32xf32>, vector<32x128xf32>, vector<8x128xf32> -> vector<8x128xf32>
    %c0_12 = arith.constant 0 : index
    %c0_13 = arith.constant 0 : index
    %8 = vector.load %arg4[%c0_12, %c0_13] : memref<1x128xf32, #tpu.memory_space<vmem>>, vector<1x128xf32>
    %9 = vector.broadcast %8 : vector<1x128xf32> to vector<8x128xf32>
    %10 = arith.addf %7, %9 : vector<8x128xf32>
    %cst_14 = arith.constant 0.000000e+00 : f32
    %11 = vector.broadcast %cst_14 : f32 to vector<1x32xf32>
    %12 = vector.extract_strided_slice %10 {offsets = [0, 0], sizes = [1, 128], strides = [1, 1]} : vector<8x128xf32> to vector<1x128xf32>
    %cst_15 = arith.constant dense<0.000000e+00> : vector<1x128xf32>
    %13 = tpu.matmul %11, %2, %cst_15 {dimension_numbers = #tpu.dot_dimension_numbers<[1], [0], [0], [1], [0, 0, 1, 1], [], []>} : vector<1x32xf32>, vector<32x128xf32>, vector<1x128xf32> -> vector<1x128xf32>
    %14 = arith.addf %12, %13 : vector<1x128xf32>
    %15 = arith.negf %14 : vector<1x128xf32>
    %16 = math.exp %15 : vector<1x128xf32>
    %cst_16 = arith.constant 1.000000e+00 : f32
    %17 = vector.broadcast %cst_16 : f32 to vector<1x128xf32>
    %18 = arith.addf %17, %16 : vector<1x128xf32>
    %19 = arith.divf %17, %18 : vector<1x128xf32>
    %20 = math.tanh %14 : vector<1x128xf32>
    %21 = vector.extract_strided_slice %19 {offsets = [0, 0], sizes = [1, 32], strides = [1, 1]} : vector<1x128xf32> to vector<1x32xf32>
    %22 = vector.extract_strided_slice %19 {offsets = [0, 32], sizes = [1, 32], strides = [1, 1]} : vector<1x128xf32> to vector<1x32xf32>
    %23 = vector.extract_strided_slice %20 {offsets = [0, 64], sizes = [1, 32], strides = [1, 1]} : vector<1x128xf32> to vector<1x32xf32>
    %24 = vector.extract_strided_slice %19 {offsets = [0, 96], sizes = [1, 32], strides = [1, 1]} : vector<1x128xf32> to vector<1x32xf32>
    %25 = arith.mulf %22, %11 : vector<1x32xf32>
    %26 = arith.mulf %21, %23 : vector<1x32xf32>
    %27 = arith.addf %25, %26 : vector<1x32xf32>
    %28 = math.tanh %27 : vector<1x32xf32>
    %29 = arith.mulf %24, %28 : vector<1x32xf32>
    %cst_17 = arith.constant dense<0.000000e+00> : vector<1x128xf32>
    %30 = tpu.matmul %29, %3, %cst_17 {dimension_numbers = #tpu.dot_dimension_numbers<[1], [0], [0], [1], [0, 0, 1, 1], [], []>} : vector<1x32xf32>, vector<32x128xf32>, vector<1x128xf32> -> vector<1x128xf32>
    %cst_18 = arith.constant dense<0.000000e+00> : vector<1x128xf32>
    %31 = tpu.matmul %11, %4, %cst_18 {dimension_numbers = #tpu.dot_dimension_numbers<[1], [0], [0], [1], [0, 0, 1, 1], [], []>} : vector<1x32xf32>, vector<32x128xf32>, vector<1x128xf32> -> vector<1x128xf32>
    %32 = arith.addf %30, %31 : vector<1x128xf32>
    %33 = arith.addf %32, %5 : vector<1x128xf32>
    %34 = arith.negf %33 : vector<1x128xf32>
    %35 = math.exp %34 : vector<1x128xf32>
    %cst_19 = arith.constant 1.000000e+00 : f32
    %36 = vector.broadcast %cst_19 : f32 to vector<1x128xf32>
    %37 = arith.addf %36, %35 : vector<1x128xf32>
    %38 = arith.divf %36, %37 : vector<1x128xf32>
    %39 = math.tanh %33 : vector<1x128xf32>
    %40 = vector.extract_strided_slice %38 {offsets = [0, 0], sizes = [1, 32], strides = [1, 1]} : vector<1x128xf32> to vector<1x32xf32>
    %41 = vector.extract_strided_slice %38 {offsets = [0, 32], sizes = [1, 32], strides = [1, 1]} : vector<1x128xf32> to vector<1x32xf32>
    %42 = vector.extract_strided_slice %39 {offsets = [0, 64], sizes = [1, 32], strides = [1, 1]} : vector<1x128xf32> to vector<1x32xf32>
    %43 = vector.extract_strided_slice %38 {offsets = [0, 96], sizes = [1, 32], strides = [1, 1]} : vector<1x128xf32> to vector<1x32xf32>
    %44 = arith.mulf %41, %11 : vector<1x32xf32>
    %45 = arith.mulf %40, %42 : vector<1x32xf32>
    %46 = arith.addf %44, %45 : vector<1x32xf32>
    %47 = math.tanh %46 : vector<1x32xf32>
    %48 = arith.mulf %43, %47 : vector<1x32xf32>
    %49 = vector.extract_strided_slice %10 {offsets = [1, 0], sizes = [1, 128], strides = [1, 1]} : vector<8x128xf32> to vector<1x128xf32>
    %cst_20 = arith.constant dense<0.000000e+00> : vector<1x128xf32>
    %50 = tpu.matmul %29, %2, %cst_20 {dimension_numbers = #tpu.dot_dimension_numbers<[1], [0], [0], [1], [0, 0, 1, 1], [], []>} : vector<1x32xf32>, vector<32x128xf32>, vector<1x128xf32> -> vector<1x128xf32>
    %51 = arith.addf %49, %50 : vector<1x128xf32>
    %52 = arith.negf %51 : vector<1x128xf32>
    %53 = math.exp %52 : vector<1x128xf32>
    %cst_21 = arith.constant 1.000000e+00 : f32
    %54 = vector.broadcast %cst_21 : f32 to vector<1x128xf32>
    %55 = arith.addf %54, %53 : vector<1x128xf32>
    %56 = arith.divf %54, %55 : vector<1x128xf32>
    %57 = math.tanh %51 : vector<1x128xf32>
    %58 = vector.extract_strided_slice %56 {offsets = [0, 0], sizes = [1, 32], strides = [1, 1]} : vector<1x128xf32> to vector<1x32xf32>
    %59 = vector.extract_strided_slice %56 {offsets = [0, 32], sizes = [1, 32], strides = [1, 1]} : vector<1x128xf32> to vector<1x32xf32>
    %60 = vector.extract_strided_slice %57 {offsets = [0, 64], sizes = [1, 32], strides = [1, 1]} : vector<1x128xf32> to vector<1x32xf32>
    %61 = vector.extract_strided_slice %56 {offsets = [0, 96], sizes = [1, 32], strides = [1, 1]} : vector<1x128xf32> to vector<1x32xf32>
    %62 = arith.mulf %59, %27 : vector<1x32xf32>
    %63 = arith.mulf %58, %60 : vector<1x32xf32>
    %64 = arith.addf %62, %63 : vector<1x32xf32>
    %65 = math.tanh %64 : vector<1x32xf32>
    %66 = arith.mulf %61, %65 : vector<1x32xf32>
    %cst_22 = arith.constant dense<0.000000e+00> : vector<1x128xf32>
    %67 = tpu.matmul %66, %3, %cst_22 {dimension_numbers = #tpu.dot_dimension_numbers<[1], [0], [0], [1], [0, 0, 1, 1], [], []>} : vector<1x32xf32>, vector<32x128xf32>, vector<1x128xf32> -> vector<1x128xf32>
    %cst_23 = arith.constant dense<0.000000e+00> : vector<1x128xf32>
    %68 = tpu.matmul %48, %4, %cst_23 {dimension_numbers = #tpu.dot_dimension_numbers<[1], [0], [0], [1], [0, 0, 1, 1], [], []>} : vector<1x32xf32>, vector<32x128xf32>, vector<1x128xf32> -> vector<1x128xf32>
    %69 = arith.addf %67, %68 : vector<1x128xf32>
    %70 = arith.addf %69, %5 : vector<1x128xf32>
    %71 = arith.negf %70 : vector<1x128xf32>
    %72 = math.exp %71 : vector<1x128xf32>
    %cst_24 = arith.constant 1.000000e+00 : f32
    %73 = vector.broadcast %cst_24 : f32 to vector<1x128xf32>
    %74 = arith.addf %73, %72 : vector<1x128xf32>
    %75 = arith.divf %73, %74 : vector<1x128xf32>
    %76 = math.tanh %70 : vector<1x128xf32>
    %77 = vector.extract_strided_slice %75 {offsets = [0, 0], sizes = [1, 32], strides = [1, 1]} : vector<1x128xf32> to vector<1x32xf32>
    %78 = vector.extract_strided_slice %75 {offsets = [0, 32], sizes = [1, 32], strides = [1, 1]} : vector<1x128xf32> to vector<1x32xf32>
    %79 = vector.extract_strided_slice %76 {offsets = [0, 64], sizes = [1, 32], strides = [1, 1]} : vector<1x128xf32> to vector<1x32xf32>
    %80 = vector.extract_strided_slice %75 {offsets = [0, 96], sizes = [1, 32], strides = [1, 1]} : vector<1x128xf32> to vector<1x32xf32>
    %81 = arith.mulf %78, %46 : vector<1x32xf32>
    %82 = arith.mulf %77, %79 : vector<1x32xf32>
    %83 = arith.addf %81, %82 : vector<1x32xf32>
    %84 = math.tanh %83 : vector<1x32xf32>
    %85 = arith.mulf %80, %84 : vector<1x32xf32>
    %86 = vector.extract_strided_slice %10 {offsets = [2, 0], sizes = [1, 128], strides = [1, 1]} : vector<8x128xf32> to vector<1x128xf32>
    %cst_25 = arith.constant dense<0.000000e+00> : vector<1x128xf32>
    %87 = tpu.matmul %66, %2, %cst_25 {dimension_numbers = #tpu.dot_dimension_numbers<[1], [0], [0], [1], [0, 0, 1, 1], [], []>} : vector<1x32xf32>, vector<32x128xf32>, vector<1x128xf32> -> vector<1x128xf32>
    %88 = arith.addf %86, %87 : vector<1x128xf32>
    %89 = arith.negf %88 : vector<1x128xf32>
    %90 = math.exp %89 : vector<1x128xf32>
    %cst_26 = arith.constant 1.000000e+00 : f32
    %91 = vector.broadcast %cst_26 : f32 to vector<1x128xf32>
    %92 = arith.addf %91, %90 : vector<1x128xf32>
    %93 = arith.divf %91, %92 : vector<1x128xf32>
    %94 = math.tanh %88 : vector<1x128xf32>
    %95 = vector.extract_strided_slice %93 {offsets = [0, 0], sizes = [1, 32], strides = [1, 1]} : vector<1x128xf32> to vector<1x32xf32>
    %96 = vector.extract_strided_slice %93 {offsets = [0, 32], sizes = [1, 32], strides = [1, 1]} : vector<1x128xf32> to vector<1x32xf32>
    %97 = vector.extract_strided_slice %94 {offsets = [0, 64], sizes = [1, 32], strides = [1, 1]} : vector<1x128xf32> to vector<1x32xf32>
    %98 = vector.extract_strided_slice %93 {offsets = [0, 96], sizes = [1, 32], strides = [1, 1]} : vector<1x128xf32> to vector<1x32xf32>
    %99 = arith.mulf %96, %64 : vector<1x32xf32>
    %100 = arith.mulf %95, %97 : vector<1x32xf32>
    %101 = arith.addf %99, %100 : vector<1x32xf32>
    %102 = math.tanh %101 : vector<1x32xf32>
    %103 = arith.mulf %98, %102 : vector<1x32xf32>
    %cst_27 = arith.constant dense<0.000000e+00> : vector<1x128xf32>
    %104 = tpu.matmul %103, %3, %cst_27 {dimension_numbers = #tpu.dot_dimension_numbers<[1], [0], [0], [1], [0, 0, 1, 1], [], []>} : vector<1x32xf32>, vector<32x128xf32>, vector<1x128xf32> -> vector<1x128xf32>
    %cst_28 = arith.constant dense<0.000000e+00> : vector<1x128xf32>
    %105 = tpu.matmul %85, %4, %cst_28 {dimension_numbers = #tpu.dot_dimension_numbers<[1], [0], [0], [1], [0, 0, 1, 1], [], []>} : vector<1x32xf32>, vector<32x128xf32>, vector<1x128xf32> -> vector<1x128xf32>
    %106 = arith.addf %104, %105 : vector<1x128xf32>
    %107 = arith.addf %106, %5 : vector<1x128xf32>
    %108 = arith.negf %107 : vector<1x128xf32>
    %109 = math.exp %108 : vector<1x128xf32>
    %cst_29 = arith.constant 1.000000e+00 : f32
    %110 = vector.broadcast %cst_29 : f32 to vector<1x128xf32>
    %111 = arith.addf %110, %109 : vector<1x128xf32>
    %112 = arith.divf %110, %111 : vector<1x128xf32>
    %113 = math.tanh %107 : vector<1x128xf32>
    %114 = vector.extract_strided_slice %112 {offsets = [0, 0], sizes = [1, 32], strides = [1, 1]} : vector<1x128xf32> to vector<1x32xf32>
    %115 = vector.extract_strided_slice %112 {offsets = [0, 32], sizes = [1, 32], strides = [1, 1]} : vector<1x128xf32> to vector<1x32xf32>
    %116 = vector.extract_strided_slice %113 {offsets = [0, 64], sizes = [1, 32], strides = [1, 1]} : vector<1x128xf32> to vector<1x32xf32>
    %117 = vector.extract_strided_slice %112 {offsets = [0, 96], sizes = [1, 32], strides = [1, 1]} : vector<1x128xf32> to vector<1x32xf32>
    %118 = arith.mulf %115, %83 : vector<1x32xf32>
    %119 = arith.mulf %114, %116 : vector<1x32xf32>
    %120 = arith.addf %118, %119 : vector<1x32xf32>
    %121 = math.tanh %120 : vector<1x32xf32>
    %122 = arith.mulf %117, %121 : vector<1x32xf32>
    %123 = vector.extract_strided_slice %10 {offsets = [3, 0], sizes = [1, 128], strides = [1, 1]} : vector<8x128xf32> to vector<1x128xf32>
    %cst_30 = arith.constant dense<0.000000e+00> : vector<1x128xf32>
    %124 = tpu.matmul %103, %2, %cst_30 {dimension_numbers = #tpu.dot_dimension_numbers<[1], [0], [0], [1], [0, 0, 1, 1], [], []>} : vector<1x32xf32>, vector<32x128xf32>, vector<1x128xf32> -> vector<1x128xf32>
    %125 = arith.addf %123, %124 : vector<1x128xf32>
    %126 = arith.negf %125 : vector<1x128xf32>
    %127 = math.exp %126 : vector<1x128xf32>
    %cst_31 = arith.constant 1.000000e+00 : f32
    %128 = vector.broadcast %cst_31 : f32 to vector<1x128xf32>
    %129 = arith.addf %128, %127 : vector<1x128xf32>
    %130 = arith.divf %128, %129 : vector<1x128xf32>
    %131 = math.tanh %125 : vector<1x128xf32>
    %132 = vector.extract_strided_slice %130 {offsets = [0, 0], sizes = [1, 32], strides = [1, 1]} : vector<1x128xf32> to vector<1x32xf32>
    %133 = vector.extract_strided_slice %130 {offsets = [0, 32], sizes = [1, 32], strides = [1, 1]} : vector<1x128xf32> to vector<1x32xf32>
    %134 = vector.extract_strided_slice %131 {offsets = [0, 64], sizes = [1, 32], strides = [1, 1]} : vector<1x128xf32> to vector<1x32xf32>
    %135 = vector.extract_strided_slice %130 {offsets = [0, 96], sizes = [1, 32], strides = [1, 1]} : vector<1x128xf32> to vector<1x32xf32>
    %136 = arith.mulf %133, %101 : vector<1x32xf32>
    %137 = arith.mulf %132, %134 : vector<1x32xf32>
    %138 = arith.addf %136, %137 : vector<1x32xf32>
    %139 = math.tanh %138 : vector<1x32xf32>
    %140 = arith.mulf %135, %139 : vector<1x32xf32>
    %cst_32 = arith.constant dense<0.000000e+00> : vector<1x128xf32>
    %141 = tpu.matmul %140, %3, %cst_32 {dimension_numbers = #tpu.dot_dimension_numbers<[1], [0], [0], [1], [0, 0, 1, 1], [], []>} : vector<1x32xf32>, vector<32x128xf32>, vector<1x128xf32> -> vector<1x128xf32>
    %cst_33 = arith.constant dense<0.000000e+00> : vector<1x128xf32>
    %142 = tpu.matmul %122, %4, %cst_33 {dimension_numbers = #tpu.dot_dimension_numbers<[1], [0], [0], [1], [0, 0, 1, 1], [], []>} : vector<1x32xf32>, vector<32x128xf32>, vector<1x128xf32> -> vector<1x128xf32>
    %143 = arith.addf %141, %142 : vector<1x128xf32>
    %144 = arith.addf %143, %5 : vector<1x128xf32>
    %145 = arith.negf %144 : vector<1x128xf32>
    %146 = math.exp %145 : vector<1x128xf32>
    %cst_34 = arith.constant 1.000000e+00 : f32
    %147 = vector.broadcast %cst_34 : f32 to vector<1x128xf32>
    %148 = arith.addf %147, %146 : vector<1x128xf32>
    %149 = arith.divf %147, %148 : vector<1x128xf32>
    %150 = math.tanh %144 : vector<1x128xf32>
    %151 = vector.extract_strided_slice %149 {offsets = [0, 0], sizes = [1, 32], strides = [1, 1]} : vector<1x128xf32> to vector<1x32xf32>
    %152 = vector.extract_strided_slice %149 {offsets = [0, 32], sizes = [1, 32], strides = [1, 1]} : vector<1x128xf32> to vector<1x32xf32>
    %153 = vector.extract_strided_slice %150 {offsets = [0, 64], sizes = [1, 32], strides = [1, 1]} : vector<1x128xf32> to vector<1x32xf32>
    %154 = vector.extract_strided_slice %149 {offsets = [0, 96], sizes = [1, 32], strides = [1, 1]} : vector<1x128xf32> to vector<1x32xf32>
    %155 = arith.mulf %152, %120 : vector<1x32xf32>
    %156 = arith.mulf %151, %153 : vector<1x32xf32>
    %157 = arith.addf %155, %156 : vector<1x32xf32>
    %158 = math.tanh %157 : vector<1x32xf32>
    %159 = arith.mulf %154, %158 : vector<1x32xf32>
    %160 = vector.extract_strided_slice %10 {offsets = [4, 0], sizes = [1, 128], strides = [1, 1]} : vector<8x128xf32> to vector<1x128xf32>
    %cst_35 = arith.constant dense<0.000000e+00> : vector<1x128xf32>
    %161 = tpu.matmul %140, %2, %cst_35 {dimension_numbers = #tpu.dot_dimension_numbers<[1], [0], [0], [1], [0, 0, 1, 1], [], []>} : vector<1x32xf32>, vector<32x128xf32>, vector<1x128xf32> -> vector<1x128xf32>
    %162 = arith.addf %160, %161 : vector<1x128xf32>
    %163 = arith.negf %162 : vector<1x128xf32>
    %164 = math.exp %163 : vector<1x128xf32>
    %cst_36 = arith.constant 1.000000e+00 : f32
    %165 = vector.broadcast %cst_36 : f32 to vector<1x128xf32>
    %166 = arith.addf %165, %164 : vector<1x128xf32>
    %167 = arith.divf %165, %166 : vector<1x128xf32>
    %168 = math.tanh %162 : vector<1x128xf32>
    %169 = vector.extract_strided_slice %167 {offsets = [0, 0], sizes = [1, 32], strides = [1, 1]} : vector<1x128xf32> to vector<1x32xf32>
    %170 = vector.extract_strided_slice %167 {offsets = [0, 32], sizes = [1, 32], strides = [1, 1]} : vector<1x128xf32> to vector<1x32xf32>
    %171 = vector.extract_strided_slice %168 {offsets = [0, 64], sizes = [1, 32], strides = [1, 1]} : vector<1x128xf32> to vector<1x32xf32>
    %172 = vector.extract_strided_slice %167 {offsets = [0, 96], sizes = [1, 32], strides = [1, 1]} : vector<1x128xf32> to vector<1x32xf32>
    %173 = arith.mulf %170, %138 : vector<1x32xf32>
    %174 = arith.mulf %169, %171 : vector<1x32xf32>
    %175 = arith.addf %173, %174 : vector<1x32xf32>
    %176 = math.tanh %175 : vector<1x32xf32>
    %177 = arith.mulf %172, %176 : vector<1x32xf32>
    %cst_37 = arith.constant dense<0.000000e+00> : vector<1x128xf32>
    %178 = tpu.matmul %177, %3, %cst_37 {dimension_numbers = #tpu.dot_dimension_numbers<[1], [0], [0], [1], [0, 0, 1, 1], [], []>} : vector<1x32xf32>, vector<32x128xf32>, vector<1x128xf32> -> vector<1x128xf32>
    %cst_38 = arith.constant dense<0.000000e+00> : vector<1x128xf32>
    %179 = tpu.matmul %159, %4, %cst_38 {dimension_numbers = #tpu.dot_dimension_numbers<[1], [0], [0], [1], [0, 0, 1, 1], [], []>} : vector<1x32xf32>, vector<32x128xf32>, vector<1x128xf32> -> vector<1x128xf32>
    %180 = arith.addf %178, %179 : vector<1x128xf32>
    %181 = arith.addf %180, %5 : vector<1x128xf32>
    %182 = arith.negf %181 : vector<1x128xf32>
    %183 = math.exp %182 : vector<1x128xf32>
    %cst_39 = arith.constant 1.000000e+00 : f32
    %184 = vector.broadcast %cst_39 : f32 to vector<1x128xf32>
    %185 = arith.addf %184, %183 : vector<1x128xf32>
    %186 = arith.divf %184, %185 : vector<1x128xf32>
    %187 = math.tanh %181 : vector<1x128xf32>
    %188 = vector.extract_strided_slice %186 {offsets = [0, 0], sizes = [1, 32], strides = [1, 1]} : vector<1x128xf32> to vector<1x32xf32>
    %189 = vector.extract_strided_slice %186 {offsets = [0, 32], sizes = [1, 32], strides = [1, 1]} : vector<1x128xf32> to vector<1x32xf32>
    %190 = vector.extract_strided_slice %187 {offsets = [0, 64], sizes = [1, 32], strides = [1, 1]} : vector<1x128xf32> to vector<1x32xf32>
    %191 = vector.extract_strided_slice %186 {offsets = [0, 96], sizes = [1, 32], strides = [1, 1]} : vector<1x128xf32> to vector<1x32xf32>
    %192 = arith.mulf %189, %157 : vector<1x32xf32>
    %193 = arith.mulf %188, %190 : vector<1x32xf32>
    %194 = arith.addf %192, %193 : vector<1x32xf32>
    %195 = math.tanh %194 : vector<1x32xf32>
    %196 = arith.mulf %191, %195 : vector<1x32xf32>
    %197 = vector.extract_strided_slice %10 {offsets = [5, 0], sizes = [1, 128], strides = [1, 1]} : vector<8x128xf32> to vector<1x128xf32>
    %cst_40 = arith.constant dense<0.000000e+00> : vector<1x128xf32>
    %198 = tpu.matmul %177, %2, %cst_40 {dimension_numbers = #tpu.dot_dimension_numbers<[1], [0], [0], [1], [0, 0, 1, 1], [], []>} : vector<1x32xf32>, vector<32x128xf32>, vector<1x128xf32> -> vector<1x128xf32>
    %199 = arith.addf %197, %198 : vector<1x128xf32>
    %200 = arith.negf %199 : vector<1x128xf32>
    %201 = math.exp %200 : vector<1x128xf32>
    %cst_41 = arith.constant 1.000000e+00 : f32
    %202 = vector.broadcast %cst_41 : f32 to vector<1x128xf32>
    %203 = arith.addf %202, %201 : vector<1x128xf32>
    %204 = arith.divf %202, %203 : vector<1x128xf32>
    %205 = math.tanh %199 : vector<1x128xf32>
    %206 = vector.extract_strided_slice %204 {offsets = [0, 0], sizes = [1, 32], strides = [1, 1]} : vector<1x128xf32> to vector<1x32xf32>
    %207 = vector.extract_strided_slice %204 {offsets = [0, 32], sizes = [1, 32], strides = [1, 1]} : vector<1x128xf32> to vector<1x32xf32>
    %208 = vector.extract_strided_slice %205 {offsets = [0, 64], sizes = [1, 32], strides = [1, 1]} : vector<1x128xf32> to vector<1x32xf32>
    %209 = vector.extract_strided_slice %204 {offsets = [0, 96], sizes = [1, 32], strides = [1, 1]} : vector<1x128xf32> to vector<1x32xf32>
    %210 = arith.mulf %207, %175 : vector<1x32xf32>
    %211 = arith.mulf %206, %208 : vector<1x32xf32>
    %212 = arith.addf %210, %211 : vector<1x32xf32>
    %213 = math.tanh %212 : vector<1x32xf32>
    %214 = arith.mulf %209, %213 : vector<1x32xf32>
    %cst_42 = arith.constant dense<0.000000e+00> : vector<1x128xf32>
    %215 = tpu.matmul %214, %3, %cst_42 {dimension_numbers = #tpu.dot_dimension_numbers<[1], [0], [0], [1], [0, 0, 1, 1], [], []>} : vector<1x32xf32>, vector<32x128xf32>, vector<1x128xf32> -> vector<1x128xf32>
    %cst_43 = arith.constant dense<0.000000e+00> : vector<1x128xf32>
    %216 = tpu.matmul %196, %4, %cst_43 {dimension_numbers = #tpu.dot_dimension_numbers<[1], [0], [0], [1], [0, 0, 1, 1], [], []>} : vector<1x32xf32>, vector<32x128xf32>, vector<1x128xf32> -> vector<1x128xf32>
    %217 = arith.addf %215, %216 : vector<1x128xf32>
    %218 = arith.addf %217, %5 : vector<1x128xf32>
    %219 = arith.negf %218 : vector<1x128xf32>
    %220 = math.exp %219 : vector<1x128xf32>
    %cst_44 = arith.constant 1.000000e+00 : f32
    %221 = vector.broadcast %cst_44 : f32 to vector<1x128xf32>
    %222 = arith.addf %221, %220 : vector<1x128xf32>
    %223 = arith.divf %221, %222 : vector<1x128xf32>
    %224 = math.tanh %218 : vector<1x128xf32>
    %225 = vector.extract_strided_slice %223 {offsets = [0, 0], sizes = [1, 32], strides = [1, 1]} : vector<1x128xf32> to vector<1x32xf32>
    %226 = vector.extract_strided_slice %223 {offsets = [0, 32], sizes = [1, 32], strides = [1, 1]} : vector<1x128xf32> to vector<1x32xf32>
    %227 = vector.extract_strided_slice %224 {offsets = [0, 64], sizes = [1, 32], strides = [1, 1]} : vector<1x128xf32> to vector<1x32xf32>
    %228 = vector.extract_strided_slice %223 {offsets = [0, 96], sizes = [1, 32], strides = [1, 1]} : vector<1x128xf32> to vector<1x32xf32>
    %229 = arith.mulf %226, %194 : vector<1x32xf32>
    %230 = arith.mulf %225, %227 : vector<1x32xf32>
    %231 = arith.addf %229, %230 : vector<1x32xf32>
    %232 = math.tanh %231 : vector<1x32xf32>
    %233 = arith.mulf %228, %232 : vector<1x32xf32>
    %234 = vector.extract_strided_slice %10 {offsets = [6, 0], sizes = [1, 128], strides = [1, 1]} : vector<8x128xf32> to vector<1x128xf32>
    %cst_45 = arith.constant dense<0.000000e+00> : vector<1x128xf32>
    %235 = tpu.matmul %214, %2, %cst_45 {dimension_numbers = #tpu.dot_dimension_numbers<[1], [0], [0], [1], [0, 0, 1, 1], [], []>} : vector<1x32xf32>, vector<32x128xf32>, vector<1x128xf32> -> vector<1x128xf32>
    %236 = arith.addf %234, %235 : vector<1x128xf32>
    %237 = arith.negf %236 : vector<1x128xf32>
    %238 = math.exp %237 : vector<1x128xf32>
    %cst_46 = arith.constant 1.000000e+00 : f32
    %239 = vector.broadcast %cst_46 : f32 to vector<1x128xf32>
    %240 = arith.addf %239, %238 : vector<1x128xf32>
    %241 = arith.divf %239, %240 : vector<1x128xf32>
    %242 = math.tanh %236 : vector<1x128xf32>
    %243 = vector.extract_strided_slice %241 {offsets = [0, 0], sizes = [1, 32], strides = [1, 1]} : vector<1x128xf32> to vector<1x32xf32>
    %244 = vector.extract_strided_slice %241 {offsets = [0, 32], sizes = [1, 32], strides = [1, 1]} : vector<1x128xf32> to vector<1x32xf32>
    %245 = vector.extract_strided_slice %242 {offsets = [0, 64], sizes = [1, 32], strides = [1, 1]} : vector<1x128xf32> to vector<1x32xf32>
    %246 = vector.extract_strided_slice %241 {offsets = [0, 96], sizes = [1, 32], strides = [1, 1]} : vector<1x128xf32> to vector<1x32xf32>
    %247 = arith.mulf %244, %212 : vector<1x32xf32>
    %248 = arith.mulf %243, %245 : vector<1x32xf32>
    %249 = arith.addf %247, %248 : vector<1x32xf32>
    %250 = math.tanh %249 : vector<1x32xf32>
    %251 = arith.mulf %246, %250 : vector<1x32xf32>
    %cst_47 = arith.constant dense<0.000000e+00> : vector<1x128xf32>
    %252 = tpu.matmul %251, %3, %cst_47 {dimension_numbers = #tpu.dot_dimension_numbers<[1], [0], [0], [1], [0, 0, 1, 1], [], []>} : vector<1x32xf32>, vector<32x128xf32>, vector<1x128xf32> -> vector<1x128xf32>
    %cst_48 = arith.constant dense<0.000000e+00> : vector<1x128xf32>
    %253 = tpu.matmul %233, %4, %cst_48 {dimension_numbers = #tpu.dot_dimension_numbers<[1], [0], [0], [1], [0, 0, 1, 1], [], []>} : vector<1x32xf32>, vector<32x128xf32>, vector<1x128xf32> -> vector<1x128xf32>
    %254 = arith.addf %252, %253 : vector<1x128xf32>
    %255 = arith.addf %254, %5 : vector<1x128xf32>
    %256 = arith.negf %255 : vector<1x128xf32>
    %257 = math.exp %256 : vector<1x128xf32>
    %cst_49 = arith.constant 1.000000e+00 : f32
    %258 = vector.broadcast %cst_49 : f32 to vector<1x128xf32>
    %259 = arith.addf %258, %257 : vector<1x128xf32>
    %260 = arith.divf %258, %259 : vector<1x128xf32>
    %261 = math.tanh %255 : vector<1x128xf32>
    %262 = vector.extract_strided_slice %260 {offsets = [0, 0], sizes = [1, 32], strides = [1, 1]} : vector<1x128xf32> to vector<1x32xf32>
    %263 = vector.extract_strided_slice %260 {offsets = [0, 32], sizes = [1, 32], strides = [1, 1]} : vector<1x128xf32> to vector<1x32xf32>
    %264 = vector.extract_strided_slice %261 {offsets = [0, 64], sizes = [1, 32], strides = [1, 1]} : vector<1x128xf32> to vector<1x32xf32>
    %265 = vector.extract_strided_slice %260 {offsets = [0, 96], sizes = [1, 32], strides = [1, 1]} : vector<1x128xf32> to vector<1x32xf32>
    %266 = arith.mulf %263, %231 : vector<1x32xf32>
    %267 = arith.mulf %262, %264 : vector<1x32xf32>
    %268 = arith.addf %266, %267 : vector<1x32xf32>
    %269 = math.tanh %268 : vector<1x32xf32>
    %270 = arith.mulf %265, %269 : vector<1x32xf32>
    %271 = vector.extract_strided_slice %10 {offsets = [7, 0], sizes = [1, 128], strides = [1, 1]} : vector<8x128xf32> to vector<1x128xf32>
    %cst_50 = arith.constant dense<0.000000e+00> : vector<1x128xf32>
    %272 = tpu.matmul %251, %2, %cst_50 {dimension_numbers = #tpu.dot_dimension_numbers<[1], [0], [0], [1], [0, 0, 1, 1], [], []>} : vector<1x32xf32>, vector<32x128xf32>, vector<1x128xf32> -> vector<1x128xf32>
    %273 = arith.addf %271, %272 : vector<1x128xf32>
    %274 = arith.negf %273 : vector<1x128xf32>
    %275 = math.exp %274 : vector<1x128xf32>
    %cst_51 = arith.constant 1.000000e+00 : f32
    %276 = vector.broadcast %cst_51 : f32 to vector<1x128xf32>
    %277 = arith.addf %276, %275 : vector<1x128xf32>
    %278 = arith.divf %276, %277 : vector<1x128xf32>
    %279 = math.tanh %273 : vector<1x128xf32>
    %280 = vector.extract_strided_slice %278 {offsets = [0, 0], sizes = [1, 32], strides = [1, 1]} : vector<1x128xf32> to vector<1x32xf32>
    %281 = vector.extract_strided_slice %278 {offsets = [0, 32], sizes = [1, 32], strides = [1, 1]} : vector<1x128xf32> to vector<1x32xf32>
    %282 = vector.extract_strided_slice %279 {offsets = [0, 64], sizes = [1, 32], strides = [1, 1]} : vector<1x128xf32> to vector<1x32xf32>
    %283 = vector.extract_strided_slice %278 {offsets = [0, 96], sizes = [1, 32], strides = [1, 1]} : vector<1x128xf32> to vector<1x32xf32>
    %284 = arith.mulf %281, %249 : vector<1x32xf32>
    %285 = arith.mulf %280, %282 : vector<1x32xf32>
    %286 = arith.addf %284, %285 : vector<1x32xf32>
    %287 = math.tanh %286 : vector<1x32xf32>
    %288 = arith.mulf %283, %287 : vector<1x32xf32>
    %cst_52 = arith.constant dense<0.000000e+00> : vector<1x128xf32>
    %289 = tpu.matmul %288, %3, %cst_52 {dimension_numbers = #tpu.dot_dimension_numbers<[1], [0], [0], [1], [0, 0, 1, 1], [], []>} : vector<1x32xf32>, vector<32x128xf32>, vector<1x128xf32> -> vector<1x128xf32>
    %cst_53 = arith.constant dense<0.000000e+00> : vector<1x128xf32>
    %290 = tpu.matmul %270, %4, %cst_53 {dimension_numbers = #tpu.dot_dimension_numbers<[1], [0], [0], [1], [0, 0, 1, 1], [], []>} : vector<1x32xf32>, vector<32x128xf32>, vector<1x128xf32> -> vector<1x128xf32>
    %291 = arith.addf %289, %290 : vector<1x128xf32>
    %292 = arith.addf %291, %5 : vector<1x128xf32>
    %293 = arith.negf %292 : vector<1x128xf32>
    %294 = math.exp %293 : vector<1x128xf32>
    %cst_54 = arith.constant 1.000000e+00 : f32
    %295 = vector.broadcast %cst_54 : f32 to vector<1x128xf32>
    %296 = arith.addf %295, %294 : vector<1x128xf32>
    %297 = arith.divf %295, %296 : vector<1x128xf32>
    %298 = math.tanh %292 : vector<1x128xf32>
    %299 = vector.extract_strided_slice %297 {offsets = [0, 0], sizes = [1, 32], strides = [1, 1]} : vector<1x128xf32> to vector<1x32xf32>
    %300 = vector.extract_strided_slice %297 {offsets = [0, 32], sizes = [1, 32], strides = [1, 1]} : vector<1x128xf32> to vector<1x32xf32>
    %301 = vector.extract_strided_slice %298 {offsets = [0, 64], sizes = [1, 32], strides = [1, 1]} : vector<1x128xf32> to vector<1x32xf32>
    %302 = vector.extract_strided_slice %297 {offsets = [0, 96], sizes = [1, 32], strides = [1, 1]} : vector<1x128xf32> to vector<1x32xf32>
    %303 = arith.mulf %300, %268 : vector<1x32xf32>
    %304 = arith.mulf %299, %301 : vector<1x32xf32>
    %305 = arith.addf %303, %304 : vector<1x32xf32>
    %306 = math.tanh %305 : vector<1x32xf32>
    %307 = arith.mulf %302, %306 : vector<1x32xf32>
    %308 = tpu.concatenate %48, %85, %122, %159, %196, %233, %270, %307 in 0 : vector<1x32xf32>, vector<1x32xf32>, vector<1x32xf32>, vector<1x32xf32>, vector<1x32xf32>, vector<1x32xf32>, vector<1x32xf32>, vector<1x32xf32> -> vector<8x32xf32>
    %c0_55 = arith.constant 0 : index
    %c0_56 = arith.constant 0 : index
    %309 = vector.load %arg8[%c0_55, %c0_56] : memref<32x40xf32, #tpu.memory_space<vmem>>, vector<32x40xf32>
    %cst_57 = arith.constant dense<0.000000e+00> : vector<8x40xf32>
    %310 = tpu.matmul %308, %309, %cst_57 {dimension_numbers = #tpu.dot_dimension_numbers<[1], [0], [0], [1], [0, 0, 1, 1], [], []>} : vector<8x32xf32>, vector<32x40xf32>, vector<8x40xf32> -> vector<8x40xf32>
    %c0_58 = arith.constant 0 : index
    %c0_59 = arith.constant 0 : index
    %311 = vector.load %arg9[%c0_58, %c0_59] : memref<1x40xf32, #tpu.memory_space<vmem>>, vector<1x40xf32>
    %312 = vector.broadcast %311 : vector<1x40xf32> to vector<8x40xf32>
    %313 = arith.addf %310, %312 : vector<8x40xf32>
    %c0_60 = arith.constant 0 : index
    %c0_61 = arith.constant 0 : index
    %c0_62 = arith.constant 0 : index
    %314 = vector.load %arg10[%c0_60, %c0_61, %c0_62] : memref<1x8x40xf32, #tpu.memory_space<vmem>>, vector<1x8x40xf32>
    %315 = vector.shape_cast %314 : vector<1x8x40xf32> to vector<8x40xf32>
    %316 = vector.shape_cast %313 : vector<8x40xf32> to vector<1x8x40xf32>
    tpu.vector_store %arg10[%c0_60, %c0_61, %c0_62], %316 {strides = array<i32>} : memref<1x8x40xf32, #tpu.memory_space<vmem>>, vector<1x8x40xf32>,
    return
  }
  func.func @transform_0(%arg0: i32) -> (i32, i32, i32) {
    %c0_i32 = arith.constant 0 : i32
    %c0_i32_0 = arith.constant 0 : i32
    %c0_i32_1 = arith.constant 0 : i32
    return %arg0, %c0_i32, %c0_i32_0 : i32, i32, i32
  }
  func.func @transform_1(%arg0: i32) -> (i32, i32) {
    %c0_i32 = arith.constant 0 : i32
    %c0_i32_0 = arith.constant 0 : i32
    %c0_i32_1 = arith.constant 0 : i32
    return %c0_i32, %c0_i32_0 : i32, i32
  }
  func.func @transform_2(%arg0: i32) -> (i32, i32) {
    %c0_i32 = arith.constant 0 : i32
    %c0_i32_0 = arith.constant 0 : i32
    %c0_i32_1 = arith.constant 0 : i32
    return %c0_i32, %c0_i32_0 : i32, i32
  }
  func.func @transform_3(%arg0: i32) -> (i32, i32) {
    %c0_i32 = arith.constant 0 : i32
    %c0_i32_0 = arith.constant 0 : i32
    %c0_i32_1 = arith.constant 0 : i32
    return %c0_i32, %c0_i32_0 : i32, i32
  }
  func.func @transform_4(%arg0: i32) -> (i32, i32) {
    %c0_i32 = arith.constant 0 : i32
    %c0_i32_0 = arith.constant 0 : i32
    %c0_i32_1 = arith.constant 0 : i32
    return %c0_i32, %c0_i32_0 : i32, i32
  }
  func.func @transform_5(%arg0: i32) -> (i32, i32) {
    %c0_i32 = arith.constant 0 : i32
    %c0_i32_0 = arith.constant 0 : i32
    %c0_i32_1 = arith.constant 0 : i32
    return %c0_i32, %c0_i32_0 : i32, i32
  }
  func.func @transform_6(%arg0: i32) -> (i32, i32) {
    %c0_i32 = arith.constant 0 : i32
    %c0_i32_0 = arith.constant 0 : i32
    %c0_i32_1 = arith.constant 0 : i32
    return %c0_i32, %c0_i32_0 : i32, i32
  }
  func.func @transform_7(%arg0: i32) -> (i32, i32) {
    %c0_i32 = arith.constant 0 : i32
    %c0_i32_0 = arith.constant 0 : i32
    %c0_i32_1 = arith.constant 0 : i32
    return %c0_i32, %c0_i32_0 : i32, i32
  }
  func.func @transform_8(%arg0: i32) -> (i32, i32) {
    %c0_i32 = arith.constant 0 : i32
    %c0_i32_0 = arith.constant 0 : i32
    %c0_i32_1 = arith.constant 0 : i32
    return %c0_i32, %c0_i32_0 : i32, i32
  }
  func.func @transform_9(%arg0: i32) -> (i32, i32, i32) {
    %c0_i32 = arith.constant 0 : i32
    %c0_i32_0 = arith.constant 0 : i32
    %c0_i32_1 = arith.constant 0 : i32
    return %arg0, %c0_i32, %c0_i32_0 : i32, i32, i32
  }
}

</mosaic_0001>

<bundles_post_ra>
// kernel: forward.2
= control target key start
LH: loop header
LB: loop body
LE: loop exit
PB: predicated region body
PF: predicated region fallthrough
CT: control target
= control target key end

     0   :  { %s1030_s18 = smov 0   ;;  %s1232_s0 = inlined_call_operand.vmem [shape: f32[2,256,3], index: 0, kind: input, shape index: {}]   ;;  %s1233_s1 = inlined_call_operand.vmem [shape: f32[3,64], index: 1, kind: input, shape index: {}]   ;;  %s1234_s2 = inlined_call_operand.vmem [shape: f32[1,64], index: 2, kind: input, shape index: {}]   ;;  %s1235_s3 = inlined_call_operand.vmem [shape: f32[64,32], index: 3, kind: input, shape index: {}]   ;;  %s1236_s4 = inlined_call_operand.vmem [shape: f32[1,32], index: 4, kind: input, shape index: {}]   ;;  %s1237_s5 = inlined_call_operand.vmem [shape: f32[2,1,32], index: 5, kind: output, shape index: {}]  }
   0x1 LB: > { %s822_s19 = sadd.s32 4294967295, %s996_s18   ;;  %p826_p0 = scmp.ge.s32.totalorder %s996_s18, 1  ;;  %s996_s18 = sphi %s1030_s18, %s15_s18  }
   0x2   : > { %p187_p1 = scmp.lt.s32.totalorder %s996_s18, 3 }
   0x4   : > { %p188_p2 = pnand %p826_p0, %p187_p1 }
   0x5   : > { %p213_p3 = scmp.lt.s32.totalorder (!%p188_p2), %s822_s19, 1 }
   0x6   : > { %191 = sbr.rel (%p188_p2) target bundleno = 490 (0x1ea), region = 40 }
   0xb   : > { %v253_v0 = vld [vmem:[%s1233_s1] sm:$0x7]  ;;  %vm358_vm0 = vcmask 1042432   ;;  %s1239_s19 = smov (!%p213_p3, %s822_s19), 1  ;;  %vm261_vm1 = vcmask 23552   ;;  %v698_v33 = vld [vmem:[%s1235_s3 + $0x38] sm:$0xff] }
   0xc   : > { %909 = vmatprep.subr.msk.mxu0 %vm358_vm0, %v253_v0  ;;  %978 = vmatprep.subr.msk.mxu1 %vm358_vm0, %v253_v0  ;;  %s866_s22 = sshll.u32 %s1239_s19, 8  ;;  %v998_v34 = vmov 0.0   ;;  %v697_v35 = vld [vmem:[%s1235_s3 + $0x30] sm:$0xff]  ;;  %v696_v36 = vld [vmem:[%s1235_s3 + $0x28] sm:$0xff]  ;;  %v695_v37 = vld [vmem:[%s1235_s3 + $0x20] sm:$0xff]  ;;  %vm999_vm2 = vmmov 0  }
   0xd   : > { %910 = vmatpush3.msk.msra.mxu0 %vm358_vm0, %v253_v0  ;;  %979 = vmatpush3.msk.msra.mxu1 %vm358_vm0, %v253_v0  ;;  %s1047_s25 = scalar_lea.vmem %s1232_s0, %s866_s22  ;;  %v694_v38 = vld [vmem:[%s1235_s3 + $0x18] sm:$0xff]  ;;  %v693_v39 = vld [vmem:[%s1235_s3 + $0x10] sm:$0xff]  ;;  %v692_v40 = vld [vmem:[%s1235_s3 + $0x8] sm:$0xff]  ;;  %vm619_vm3 = vcmask 523264   ;;  %vm773_vm4 = vcmask 253952  }
   0xe   : > { %v221_v1 = vld [vmem:[%s1047_s25] sm:$0xff]  ;;  %v222_v2 = vld [vmem:[%s1047_s25 + $0x8] sm:$0xff]  ;;  %v223_v3 = vld [vmem:[%s1047_s25 + $0x10] sm:$0xff]  ;;  %959 = vmatprep.subr.mxu1 %v998_v34 }
   0xf   : > { %911 = vmatprep.mubr.msk.f32.mxu0 %vm261_vm1, %v221_v1  ;;  %v224_v4 = vld [vmem:[%s1047_s25 + $0x18] sm:$0xff]  ;;  %v225_v5 = vld [vmem:[%s1047_s25 + $0x20] sm:$0xff]  ;;  %v239_v6 = vld [vmem:[%s1047_s25 + $0x90] sm:$0xff] }
  0x10   : > { %912 = vmatmul.mubr.msk.f32.vlgmr.msra.gmra.mxu0 %vm261_vm1, %v222_v2  ;;  %v240_v7 = vld [vmem:[%s1047_s25 + $0x98] sm:$0xff]  ;;  %v241_v8 = vld [vmem:[%s1047_s25 + $0xa0] sm:$0xff]  ;;  %v226_v9 = vld [vmem:[%s1047_s25 + $0x28] sm:$0xff]  ;;  %938 = vmatprep.mubr.msk.f32.mxu1 %vm261_vm1, %v239_v6 }
  0x11   : > { %914 = vmatprep.mubr.msk.f32.mxu0 %vm261_vm1, %v223_v3  ;;  %v227_v10 = vld [vmem:[%s1047_s25 + $0x30] sm:$0xff]  ;;  %939 = vmatmul.mubr.msk.f32.vlgmr.msra.gmra.mxu1 %vm261_vm1, %v240_v7  ;;  %v242_v11 = vld [vmem:[%s1047_s25 + $0xa8] sm:$0xff]  ;;  %v228_v13 = vld [vmem:[%s1047_s25 + $0x38] sm:$0xff] }
  0x12   : > { %941 = vmatprep.mubr.msk.f32.mxu1 %vm261_vm1, %v241_v8  ;;  %v243_v12 = vld [vmem:[%s1047_s25 + $0xb0] sm:$0xff]  ;;  %v229_v14 = vld [vmem:[%s1047_s25 + $0x40] sm:$0xff]  ;;  %v244_v15 = vld [vmem:[%s1047_s25 + $0xb8] sm:$0xff]  ;;  %960 = vmatpush3.msra.mxu1 %v698_v33 }
  0x13   : > { %v245_v16 = vld [vmem:[%s1047_s25 + $0xc0] sm:$0xff]  ;;  %v230_v17 = vld [vmem:[%s1047_s25 + $0x48] sm:$0xff]  ;;  %v231_v18 = vld [vmem:[%s1047_s25 + $0x50] sm:$0xff]  ;;  %961 = vmatprep.subr.mxu1 %v998_v34 }
  0x14   : > { %915 = vmatmul.mubr.msk.f32.gmra.mxu0 %vm261_vm1, %v224_v4  ;;  %v246_v19 = vld [vmem:[%s1047_s25 + $0xc8] sm:$0xff]  ;;  %v247_v20 = vld [vmem:[%s1047_s25 + $0xd0] sm:$0xff]  ;;  %v232_v21 = vld [vmem:[%s1047_s25 + $0x58] sm:$0xff]  ;;  %962 = vmatpush3.msra.mxu1 %v697_v35 }
  0x15   : > { %917 = vmatprep.mubr.msk.f32.mxu0 %vm261_vm1, %v225_v5  ;;  %942 = vmatmul.mubr.msk.f32.gmra.mxu1 %vm261_vm1, %v242_v11  ;;  %v233_v22 = vld [vmem:[%s1047_s25 + $0x60] sm:$0xff]  ;;  %v248_v23 = vld [vmem:[%s1047_s25 + $0xd8] sm:$0xff]  ;;  %v234_v25 = vld [vmem:[%s1047_s25 + $0x68] sm:$0xff] }
  0x16   : > { %944 = vmatprep.mubr.msk.f32.mxu1 %vm261_vm1, %v243_v12  ;;  %v249_v24 = vld [vmem:[%s1047_s25 + $0xe0] sm:$0xff]  ;;  %v235_v26 = vld [vmem:[%s1047_s25 + $0x70] sm:$0xff]  ;;  %v250_v27 = vld [vmem:[%s1047_s25 + $0xe8] sm:$0xff]  ;;  %963 = vmatprep.subr.mxu1 %v998_v34 }
  0x17   : > { %v251_v28 = vld [vmem:[%s1047_s25 + $0xf0] sm:$0xff]  ;;  %v236_v29 = vld [vmem:[%s1047_s25 + $0x78] sm:$0xff]  ;;  %v237_v30 = vld [vmem:[%s1047_s25 + $0x80] sm:$0xff]  ;;  %964 = vmatpush3.msra.mxu1 %v696_v36 }
  0x18   : > { %918 = vmatmul.mubr.msk.f32.gmra.mxu0 %vm261_vm1, %v226_v9  ;;  %v252_v31 = vld [vmem:[%s1047_s25 + $0xf8] sm:$0xff]  ;;  %v238_v32 = vld [vmem:[%s1047_s25 + $0x88] sm:$0xff]  ;;  %965 = vmatprep.subr.mxu1 %v998_v34  ;;  %v691_v41 = vld [vmem:[%s1235_s3] sm:$0xff]  ;;  %s220_s25 = scalar_lea.vmem %s1237_s5, %s1239_s19 }
  0x19   : > { %920 = vmatprep.mubr.msk.f32.mxu0 %vm261_vm1, %v227_v10  ;;  %945 = vmatmul.mubr.msk.f32.gmra.mxu1 %vm261_vm1, %v244_v15  ;;  %v1140_v42 = vld [vmem:[%s1234_s2] ss:$0 sm:$0xff] }
  0x1a   : > { %947 = vmatprep.mubr.msk.f32.mxu1 %vm261_vm1, %v245_v16  ;;  %966 = vmatpush3.msra.mxu1 %v695_v37 }
  0x1b   : > { %967 = vmatprep.subr.mxu1 %v998_v34 }
  0x1c   : > { %921 = vmatmul.mubr.msk.f32.gmra.mxu0 %vm261_vm1, %v228_v13  ;;  %968 = vmatpush3.msra.mxu1 %v694_v38 }
  0x1d   : > { %923 = vmatprep.mubr.msk.f32.mxu0 %vm261_vm1, %v229_v14  ;;  %948 = vmatmul.mubr.msk.f32.gmra.mxu1 %vm261_vm1, %v246_v19 }
  0x1e   : > { %950 = vmatprep.mubr.msk.f32.mxu1 %vm261_vm1, %v247_v20  ;;  %969 = vmatprep.subr.mxu1 %v998_v34 }
  0x1f   : > { %970 = vmatpush3.msra.mxu1 %v693_v39 }
  0x20   : > { %924 = vmatmul.mubr.msk.f32.gmra.mxu0 %vm261_vm1, %v230_v17  ;;  %971 = vmatprep.subr.mxu1 %v998_v34 }
  0x21   : > { %926 = vmatprep.mubr.msk.f32.mxu0 %vm261_vm1, %v231_v18  ;;  %951 = vmatmul.mubr.msk.f32.gmra.mxu1 %vm261_vm1, %v248_v23 }
  0x22   : > { %953 = vmatprep.mubr.msk.f32.mxu1 %vm261_vm1, %v249_v24  ;;  %972 = vmatpush3.msra.mxu1 %v692_v40 }
  0x23   : > { %973 = vmatprep.subr.mxu1 %v998_v34 }
  0x24   : > { %927 = vmatmul.mubr.msk.f32.gmra.mxu0 %vm261_vm1, %v232_v21  ;;  %974 = vmatpush3.msra.mxu1 %v691_v41 }
  0x25   : > { %929 = vmatprep.mubr.msk.f32.mxu0 %vm261_vm1, %v233_v22  ;;  %954 = vmatmul.mubr.msk.f32.gmra.mxu1 %vm261_vm1, %v250_v27 }
  0x26   : > { %956 = vmatprep.mubr.msk.f32.mxu1 %vm261_vm1, %v251_v28 }
  0x28   : > { %930 = vmatmul.mubr.msk.f32.gmra.mxu0 %vm261_vm1, %v234_v25 }
  0x29   : > { %932 = vmatprep.mubr.msk.f32.mxu0 %vm261_vm1, %v235_v26  ;;  %957 = vmatmul.mubr.msk.f32.gmra.mxu1 %vm261_vm1, %v252_v31 }
  0x2a   : > { %975 = vmatprep.mubr.msk.f32.mxu1 %vm999_vm2, %v998_v34 }
  0x2c   : > { %933 = vmatmul.mubr.msk.f32.gmra.mxu0 %vm261_vm1, %v236_v29 }
  0x2d   : > { %935 = vmatprep.mubr.msk.f32.mxu0 %vm261_vm1, %v237_v30 }
  0x30   : > { %936 = vmatmul.mubr.msk.f32.gmra.mxu0 %vm261_vm1, %v238_v32 }
  0xd0   : > { %v913_v43 = vpop.f32.mrf.mxu0 }
  0xd1   : > { %v434_v44 = vadd.f32 %v913_v43, %v1140_v42  ;;  %v1145_v52 = vpop.f32.mrf.mxu1 }
  0xd2   : > { %v428_v45 = vpop.f32.mrf.mxu0 }
  0xd3   : > { %v429_v46 = vadd.f32 %v1140_v42, %v428_v45  ;;  %v588_v48 = vmax.f32 %v434_v44, 0.0  ;;  %v1149_v56 = vpop.f32.mrf.mxu1 }
  0xd4   : > { %v916_v47 = vpop.f32.mrf.mxu0 }
  0xd5   : > { %v587_v49 = vmax.f32 %v429_v46, 0.0  ;;  %v444_v50 = vadd.f32 %v916_v47, %v1140_v42  ;;  %v621_v57 = vsel %vm619_vm3, %v588_v48, 0.0  ;;  %v1155_v3 = vpop.f32.mrf.mxu1 }
  0xd6   : > { %v438_v51 = vpop.f32.mrf.mxu0 }
  0xd7   : > { %v620_v53 = vsel %vm619_vm3, %v587_v49, 0.0  ;;  %v439_v54 = vadd.f32 %v1140_v42, %v438_v51  ;;  %v590_v58 = vmax.f32 %v444_v50, 0.0  ;;  %v1161_v14 = vpop.f32.mrf.mxu1 }
  0xd8   : > { %v919_v55 = vpop.f32.mrf.mxu0  ;;  %v622_v61 = vadd.f32 %v621_v57, %v620_v53 }
  0xd9   : > { %v589_v59 = vmax.f32 %v439_v54, 0.0  ;;  %v454_v60 = vadd.f32 %v919_v55, %v1140_v42  ;;  %v625_v4 = vsel %vm619_vm3, %v590_v58, 0.0  ;;  %v1167_v25 = vpop.f32.mrf.mxu1 }
  0xda   : > { %v448_v62 = vpop.f32.mrf.mxu0 }
  0xdb   : > { %v623_v63 = vsel %vm619_vm3, %v589_v59, 0.0  ;;  %v449_v0 = vadd.f32 %v1140_v42, %v448_v62  ;;  %v592_v5 = vmax.f32 %v454_v60, 0.0  ;;  %v538_v36 = vpop.f32.mrf.mxu1 }
  0xdc   : > { %v624_v1 = vadd.f32 %v623_v63, %v622_v61  ;;  %v922_v2 = vpop.f32.mrf.mxu0 }
  0xdd   : > { %v591_v6 = vmax.f32 %v449_v0, 0.0  ;;  %v464_v7 = vadd.f32 %v922_v2, %v1140_v42  ;;  %v629_v15 = vsel %vm619_vm3, %v592_v5, 0.0  ;;  %v949_v48 = vpop.f32.mrf.mxu1 }
  0xde   : > { %v626_v8 = vadd.f32 %v625_v4, %v624_v1  ;;  %v458_v9 = vpop.f32.mrf.mxu0 }
  0xdf   : > { %v627_v10 = vsel %vm619_vm3, %v591_v6, 0.0  ;;  %v459_v11 = vadd.f32 %v1140_v42, %v458_v9  ;;  %v594_v16 = vmax.f32 %v464_v7, 0.0  ;;  %v548_v61 = vpop.f32.mrf.mxu1  ;;  %v519_v7 = vadd.f32 %v1140_v42, %v1149_v56 }
  0xe0   : > { %v628_v12 = vadd.f32 %v627_v10, %v626_v8  ;;  %v925_v13 = vpop.f32.mrf.mxu0 }
  0xe1   : > { %v593_v17 = vmax.f32 %v459_v11, 0.0  ;;  %v474_v18 = vadd.f32 %v925_v13, %v1140_v42  ;;  %v633_v26 = vsel %vm619_vm3, %v594_v16, 0.0  ;;  %v952_v9 = vpop.f32.mrf.mxu1  ;;  %v524_v13 = vadd.f32 %v1145_v52, %v1140_v42 }
  0xe2   : > { %v630_v19 = vadd.f32 %v629_v15, %v628_v12  ;;  %v468_v20 = vpop.f32.mrf.mxu0  ;;  %v539_v52 = vadd.f32 %v1140_v42, %v538_v36  ;;  %v554_v36 = vadd.f32 %v949_v48, %v1140_v42 }
  0xe3   : > { %v631_v21 = vsel %vm619_vm3, %v593_v17, 0.0  ;;  %v469_v22 = vadd.f32 %v1140_v42, %v468_v20  ;;  %v596_v27 = vmax.f32 %v474_v18, 0.0  ;;  %v605_v17 = vmax.f32 %v519_v7, 0.0  ;;  %v558_v20 = vpop.f32.mrf.mxu1 }
  0xe4   : > { %v632_v23 = vadd.f32 %v631_v21, %v630_v19  ;;  %v928_v24 = vpop.f32.mrf.mxu0  ;;  %v529_v18 = vadd.f32 %v1140_v42, %v1161_v14  ;;  %v606_v21 = vmax.f32 %v524_v13, 0.0  ;;  %v544_v14 = vadd.f32 %v1167_v25, %v1140_v42 }
  0xe5   : > { %v595_v28 = vmax.f32 %v469_v22, 0.0  ;;  %v484_v29 = vadd.f32 %v928_v24, %v1140_v42  ;;  %v637_v37 = vsel %vm619_vm3, %v596_v27, 0.0  ;;  %v534_v22 = vadd.f32 %v1155_v3, %v1140_v42 }
  0xe6   : > { %v634_v30 = vadd.f32 %v633_v26, %v632_v23  ;;  %v478_v31 = vpop.f32.mrf.mxu0  ;;  %v655_v24 = vsel %vm619_vm3, %v605_v17, 0.0  ;;  %v607_v26 = vmax.f32 %v529_v18, 0.0  ;;  %v549_v3 = vadd.f32 %v1140_v42, %v548_v61 }
  0xe7   : > { %v635_v32 = vsel %vm619_vm3, %v595_v28, 0.0  ;;  %v479_v33 = vadd.f32 %v1140_v42, %v478_v31  ;;  %v598_v38 = vmax.f32 %v484_v29, 0.0  ;;  %v955_v28 = vpop.f32.mrf.mxu1  ;;  %v657_v29 = vsel %vm619_vm3, %v606_v21, 0.0  ;;  %v699_v21 = vld [vmem:[%s1236_s4] sm:$0x1] }
  0xe8   : > { %v636_v34 = vadd.f32 %v635_v32, %v634_v30  ;;  %v931_v35 = vpop.f32.mrf.mxu0  ;;  %v608_v30 = vmax.f32 %v534_v22, 0.0  ;;  %v659_v32 = vsel %vm619_vm3, %v607_v26, 0.0 }
  0xe9   : > { %v597_v39 = vmax.f32 %v479_v33, 0.0  ;;  %v494_v40 = vadd.f32 %v931_v35, %v1140_v42  ;;  %v641_v49 = vsel %vm619_vm3, %v598_v38, 0.0  ;;  %v609_v33 = vmax.f32 %v539_v52, 0.0  ;;  %v568_v35 = vpop.f32.mrf.mxu1 }
  0xea   : > { %v638_v41 = vadd.f32 %v637_v37, %v636_v34  ;;  %v488_v43 = vpop.f32.mrf.mxu0  ;;  %v661_v37 = vsel %vm619_vm3, %v608_v30, 0.0  ;;  %v610_v38 = vmax.f32 %v544_v14, 0.0 }
  0xeb   : > { %v639_v44 = vsel %vm619_vm3, %v597_v39, 0.0  ;;  %v489_v45 = vadd.f32 %v1140_v42, %v488_v43  ;;  %v600_v50 = vmax.f32 %v494_v40, 0.0  ;;  %v663_v40 = vsel %vm619_vm3, %v609_v33, 0.0 }
  0xec   : > { %v640_v46 = vadd.f32 %v639_v44, %v638_v41  ;;  %v934_v47 = vpop.f32.mrf.mxu0  ;;  %v611_v41 = vmax.f32 %v549_v3, 0.0  ;;  %v559_v43 = vadd.f32 %v1140_v42, %v558_v20  ;;  %v958_v44 = vpop.f32.mrf.mxu1 }
  0xed   : > { %v599_v51 = vmax.f32 %v489_v45, 0.0  ;;  %v504_v53 = vadd.f32 %v934_v47, %v1140_v42  ;;  %v645_v62 = vsel %vm619_vm3, %v600_v50, 0.0  ;;  %v665_v45 = vsel %vm619_vm3, %v610_v38, 0.0 }
  0xee   : > { %v642_v54 = vadd.f32 %v641_v49, %v640_v46  ;;  %v498_v55 = vpop.f32.mrf.mxu0  ;;  %v612_v46 = vmax.f32 %v554_v36, 0.0  ;;  %v564_v47 = vadd.f32 %v952_v9, %v1140_v42  ;;  %v667_v50 = vsel %vm619_vm3, %v611_v41, 0.0 }
  0xef   : > { %v643_v57 = vsel %vm619_vm3, %v599_v51, 0.0  ;;  %v499_v58 = vadd.f32 %v1140_v42, %v498_v55  ;;  %v602_v63 = vmax.f32 %v504_v53, 0.0  ;;  %v613_v51 = vmax.f32 %v559_v43, 0.0 }
  0xf0   : > { %v644_v59 = vadd.f32 %v643_v57, %v642_v54  ;;  %v937_v60 = vpop.f32.mrf.mxu0  ;;  %v569_v53 = vadd.f32 %v1140_v42, %v568_v35  ;;  %v578_v54 = vpop.f32.mrf.mxu1  ;;  %v669_v55 = vsel %vm619_vm3, %v612_v46, 0.0  ;;  %v614_v57 = vmax.f32 %v564_v47, 0.0 }
  0xf1   : > { %v601_v0 = vmax.f32 %v499_v58, 0.0  ;;  %v514_v1 = vadd.f32 %v937_v60, %v1140_v42  ;;  %v649_v10 = vsel %vm619_vm3, %v602_v63, 0.0  ;;  %v574_v58 = vadd.f32 %v955_v28, %v1140_v42 }
  0xf2   : > { %v646_v2 = vadd.f32 %v645_v62, %v644_v59  ;;  %v508_v4 = vpop.f32.mrf.mxu0  ;;  %v671_v60 = vsel %vm619_vm3, %v613_v51, 0.0  ;;  %v615_v61 = vmax.f32 %v569_v53, 0.0  ;;  %v579_v62 = vadd.f32 %v1140_v42, %v578_v54 }
  0xf3   : > { %v647_v5 = vsel %vm619_vm3, %v601_v0, 0.0  ;;  %v509_v6 = vadd.f32 %v1140_v42, %v508_v4  ;;  %v604_v11 = vmax.f32 %v514_v1, 0.0  ;;  %v673_v0 = vsel %vm619_vm3, %v614_v57, 0.0 }
  0xf4   : > { %v648_v8 = vadd.f32 %v647_v5, %v646_v2  ;;  %v616_v1 = vmax.f32 %v574_v58, 0.0  ;;  %v584_v2 = vadd.f32 %v958_v44, %v1140_v42  ;;  %v675_v5 = vsel %vm619_vm3, %v615_v61, 0.0 }
  0xf5   : > { %v603_v12 = vmax.f32 %v509_v6, 0.0  ;;  %v653_v56 = vsel %vm619_vm3, %v604_v11, 0.0  ;;  %v617_v6 = vmax.f32 %v579_v62, 0.0 }
  0xf6   : > { %v650_v15 = vadd.f32 %v649_v10, %v648_v8  ;;  %v677_v8 = vsel %vm619_vm3, %v616_v1, 0.0  ;;  %v618_v9 = vmax.f32 %v584_v2, 0.0 }
  0xf7   : > { %v651_v16 = vsel %vm619_vm3, %v603_v12, 0.0  ;;  %v679_v11 = vsel %vm619_vm3, %v617_v6, 0.0 }
  0xf8   : > { %v652_v19 = vadd.f32 %v651_v16, %v650_v15  ;;  %v681_v13 = vsel %vm619_vm3, %v618_v9, 0.0 }
  0xfa   : > { %v654_v23 = vadd.f32 %v653_v56, %v652_v19 }
  0xfc   : > { %v656_v27 = vadd.f32 %v655_v24, %v654_v23 }
  0xfe   : > { %v658_v31 = vadd.f32 %v657_v29, %v656_v27 }
 0x100   : > { %v660_v34 = vadd.f32 %v659_v32, %v658_v31 }
 0x102   : > { %v662_v39 = vadd.f32 %v661_v37, %v660_v34 }
 0x104   : > { %v664_v25 = vadd.f32 %v663_v40, %v662_v39 }
 0x106   : > { %v666_v49 = vadd.f32 %v665_v45, %v664_v25 }
 0x108   : > { %v668_v48 = vadd.f32 %v667_v50, %v666_v49 }
 0x10a   : > { %v670_v59 = vadd.f32 %v669_v55, %v668_v48 }
 0x10c   : > { %v672_v63 = vadd.f32 %v671_v60, %v670_v59 }
 0x10e   : > { %v674_v4 = vadd.f32 %v673_v0, %v672_v63 }
 0x110   : > { %v676_v7 = vadd.f32 %v675_v5, %v674_v4 }
 0x112   : > { %v678_v10 = vadd.f32 %v677_v8, %v676_v7 }
 0x114   : > { %v680_v12 = vadd.f32 %v679_v11, %v678_v10 }
 0x116   : > { %v682_v15 = vadd.f32 %v681_v13, %v680_v12 }
 0x118   : > { %v683_v16 = vrot.slane %v682_v15, 4 }
 0x11a   : > { %v684_v17 = vadd.f32 %v683_v16, %v682_v15 }
 0x11c   : > { %v685_v18 = vrot.slane %v684_v17, 2 }
 0x11e   : > { %v686_v42 = vadd.f32 %v685_v18, %v684_v17 }
 0x120   : > { %v687_v19 = vrot.slane %v686_v42, 1 }
 0x122   : > { %v688_v20 = vadd.f32 %v687_v19, %v686_v42 }
 0x124   : > { %v690_v56 = vmul.f32 0.00390625, %v688_v20 }
 0x126   : > { %976 = vmatmul.mubr.msk.f32.vlgmr.msra.gmra.mxu1 %vm619_vm3, %v690_v56 }
 0x1e6   : > { %v769_v22 = vpop.f32.mrf.mxu1 }
 0x1e7   : > { %v770_v23 = vadd.f32 %v769_v22, %v699_v21 }
 0x1e8   : > { %v977_v24 = vpop.f32.mrf.mxu1 }
 0x1e9   : > { %774 = vst.msk [vmem:[%s220_s25] sm:$0x1] %vm773_vm4, %v770_v23 }
 0x1ea PF: > { %s15_s18 = sadd.s32 1, %s996_s18  }
 0x1eb   : > { %p12_p4 = scmp.ge.s32.totalorder %s15_s18, 4  }
 0x1ed   :  { %14 = sbr.rel (!%p12_p4) target bundleno = 1 (0x1), region = 70 }

// kernel: forward.3
= control target key start
LH: loop header
LB: loop body
LE: loop exit
PB: predicated region body
PF: predicated region fallthrough
CT: control target
= control target key end

     0   :  { %14 = vsyncpa [#allocation3], 0  ;;  %s4250_s0 = inlined_call_operand.vmem [shape: f32[2,8,32], index: 0, kind: input, shape index: {}]   ;;  %s4251_s1 = inlined_call_operand.vmem [shape: f32[32,128], index: 1, kind: input, shape index: {}]   ;;  %s4252_s2 = inlined_call_operand.vmem [shape: f32[32,128], index: 2, kind: input, shape index: {}]   ;;  %s4253_s3 = inlined_call_operand.vmem [shape: f32[1,128], index: 3, kind: input, shape index: {}]   ;;  %s4254_s4 = inlined_call_operand.vmem [shape: f32[32,128], index: 4, kind: input, shape index: {}]   ;;  %s4255_s5 = inlined_call_operand.vmem [shape: f32[32,128], index: 5, kind: input, shape index: {}]   ;;  %s4256_s6 = inlined_call_operand.vmem [shape: f32[1,128], index: 6, kind: input, shape index: {}]   ;;  %s4257_s7 = inlined_call_operand.vmem [shape: f32[32,40], index: 7, kind: input, shape index: {}]   ;;  %s4258_s8 = inlined_call_operand.vmem [shape: f32[1,40], index: 8, kind: input, shape index: {}]   ;;  %s4259_s9 = inlined_call_operand.hbm [shape: f32[2,8,40], index: 9, kind: output, shape index: {}]  }
   0x1   :  { %16 = vsyncpa [#allocation3 + $0x1], 0  ;;  %s3593_s30 = smov 0   ;;  %s3595_s10 = smov 0  }
   0x2   :  { %s3597_s11 = smov 0   ;;  %s3599_s12 = smov 0  }
   0x3 LB: > { %s3614_s13 = sadd.s32 4294967295, %s3536_s12   ;;  %s2824_s14 = sadd.s32 4294967294, %s3536_s12   ;;  %s3536_s12 = sphi %s3599_s12, %s4265_s12   ;;  %s3532_s11 = sphi %s3597_s11, %s4264_s11   ;;  %s3528_s10 = sphi %s3595_s10, %s4263_s10   ;;  %s3524_s30 = sphi %s3593_s30, %s4262_s30  }
   0x4   : > { %s3618_s15 = sadd.s32 1, %s3536_s12   ;;  %s223_s16 = sadd.s32 1, %s3532_s11 }
   0x5   : > { %s220_s17 = ssub.s32 %s3536_s12, %s3618_s15  ;;  %p233_p0 = scmp.ne.s32.totalorder %s3532_s11, %s3528_s10 }
   0x6   : > { %p221_p1 = scmp.eq.s32.totalorder %s220_s17, 0  ;;  %p234_p2 = scmp.eq.s32.totalorder %s3614_s13, 1 }
   0x7   : > { %p239_p3 = scmp.ne.s32.totalorder %s3528_s10, %s3524_s30  ;;  %p240_p4 = scmp.eq.s32.totalorder %s2824_s14, 1 }
   0x8   : > { %s3629_s18 = scalar_select %p221_p1, %s3532_s11, %s223_s16  }
   0x9   : > { %p3631_p5 = por %p234_p2, %p233_p0  ;;  %p3635_p6 = por %p240_p4, %p239_p3 }
   0xa   : > { %p2827_p7 = scmp.ge.s32.totalorder %s3536_s12, 1  ;;  %p289_p8 = scmp.lt.s32.totalorder %s3536_s12, 3 }
   0xc   : > { %p290_p9 = pnand %p2827_p7, %p289_p8 }
   0xd   : > { %p324_p10 = scmp.lt.s32.totalorder (!%p290_p9), %s3614_s13, 1  ;;  %s3540_s17 = smov (!%p290_p9), 64  }
   0xe   : > { %293 = sbr.rel (%p290_p9) target bundleno = 6492 (0x195c), region = 56  ;;  %s3541_s21 = smov (!%p290_p9), 32  }
   0xf   : > { %s321_s24 = sand.u32 (!%p290_p9), 1, %s3528_s10   ;;  %s2873_s28 = sshll.u32 (!%p290_p9), %s3614_s13, 7 }
  0x10   : > { %s2828_s25 = sshll.u32 (!%p290_p9), %s321_s24, 3 }
  0x11   : > { %s323_s14 = scalar_lea.vmem (!%p290_p9), [#allocation2], %s2828_s25 }
  0x13   : > { %v345_v0 = vld [vmem:[%s4251_s1 + $0x18] sm:$0xff]  ;;  %v3538_v2 = vmov 0.0   ;;  %v344_v3 = vld [vmem:[%s4251_s1 + $0x10] sm:$0xff]  ;;  %s325_s29 = scalar_select %p324_p10, %s3614_s13, 1  ;;  %v343_v5 = vld [vmem:[%s4251_s1 + $0x8] sm:$0xff]  ;;  %vm353_vm0 = vcmask 261120  }
  0x14   : > { %v3647_v1 = vld [vmem:[%s4252_s2 + $0x18] sm:$0xff]  ;;  %3006 = vmatprep.subr.mxu0 %v3538_v2  ;;  %3017 = vmatprep.subr.mxu1 %v3538_v2  ;;  %v3658_v4 = vld [vmem:[%s4252_s2 + $0x10] sm:$0xff]  ;;  %v3670_v6 = vld [vmem:[%s4252_s2 + $0x8] sm:$0xff]  ;;  %vm3539_vm1 = vmmov 0   ;;  %vm2649_vm2 = vcmask 1040384   ;;  %vm2651_vm3 = vcmask 1041408  }
  0x15   : > { %3007 = vmatpush3.msra.mxu0 %v345_v0  ;;  %3018 = vmatpush3.msra.mxu1 %v3647_v1  ;;  %s2829_s22 = sshll.u32 %s325_s29, 3  ;;  %v342_v7 = vld [vmem:[%s4251_s1] sm:$0xff]  ;;  %v3716_v27 = vld [vmem:[%s4255_s5 + $0x18] sm:$0xff]  ;;  %v3721_v28 = vld [vmem:[%s4255_s5 + $0x10] sm:$0xff]  ;;  %vm2653_vm4 = vcmask 1042432   ;;  %vm2655_vm5 = vcmask 1043456  }
  0x16   : > { %3008 = vmatprep.subr.mxu0 %v3538_v2  ;;  %3019 = vmatprep.subr.mxu1 %v3538_v2  ;;  %s327_s27 = scalar_lea.vmem %s4250_s0, %s2829_s22  ;;  %v3685_v8 = vld [vmem:[%s4252_s2] sm:$0xff]  ;;  %v3727_v29 = vld [vmem:[%s4254_s4 + $0x18] sm:$0xff]  ;;  %v3732_v30 = vld [vmem:[%s4254_s4 + $0x10] sm:$0xff]  ;;  %vm2657_vm6 = vcmask 1044480   ;;  %vm2659_vm7 = vcmask 1045504   ;;  %vm2661_vm8 = vcmask 1046528  }
  0x17   : > { %3009 = vmatpush3.msra.mxu0 %v344_v3  ;;  %3020 = vmatpush3.msra.mxu1 %v3658_v4  ;;  %v328_v9 = vld [vmem:[%s327_s27] sm:$0xff]  ;;  %v3738_v31 = vld [vmem:[%s4255_s5 + $0x8] sm:$0xff]  ;;  %vm2749_vm9 = vcmask 326656   ;;  %s2752_s22 = scalar_lea.sflag [#allocation3], %s321_s24  ;;  %s3542_s13 = smov [#allocation2]  }
  0x18   : > { %3010 = vmatprep.subr.mxu0 %v3538_v2  ;;  %3021 = vmatprep.subr.mxu1 %v3538_v2  ;;  %v2830_v10 = vld [vmem:[%s4253_s3] ss:$0 sm:$0xff]  ;;  %v3746_v32 = vld [vmem:[%s4254_s4 + $0x8] sm:$0xff]  ;;  %s3480_s25 = sshll.u32 %s3542_s13, 4  ;;  %s3481_s25 = int_to_ptr.vmem [resolvable:$false] %s3480_s25 }
  0x19   : > { %3011 = vmatpush3.msra.mxu0 %v343_v5  ;;  %3022 = vmatpush3.msra.mxu1 %v3670_v6  ;;  %v3752_v33 = vld [vmem:[%s4255_s5] sm:$0xff]  ;;  %s3482_s26 = scalar_lea.vmem %s3481_s25, 256 }
  0x1a   : > { %3012 = vmatprep.subr.mxu0 %v3538_v2  ;;  %3023 = vmatprep.subr.mxu1 %v3538_v2  ;;  %v3762_v34 = vld [vmem:[%s4254_s4] sm:$0xff] }
  0x1b   : > { %3013 = vmatpush3.msra.mxu0 %v342_v7  ;;  %3014 = vmatprep.mubr.msk.f32.mxu0 %vm3539_vm1, %v3538_v2  ;;  %v3807_v41 = vld [vmem:[%s4256_s6] sm:$0x1] }
  0x1c   : > { %3024 = vmatpush3.msra.mxu1 %v3685_v8  ;;  %3025 = vmatprep.mubr.msk.f32.mxu1 %vm3539_vm1, %v3538_v2 }
  0x1d   : > { %3015 = vmatmul.mubr.msk.f32.vlgmr.msra.gmra.mxu0 %vm353_vm0, %v328_v9  ;;  %3026 = vmatmul.mubr.f32.vlgmr.msra.gmra.mxu1 %v3538_v2 }
  0x1e   : > { %3028 = vmatprep.subr.mxu0 %v3538_v2  ;;  %3036 = vmatprep.mubr.msk.f32.mxu0 %vm3539_vm1, %v3538_v2 }
  0x1f   : > { %3039 = vmatprep.subr.mxu1 %v3538_v2  ;;  %3047 = vmatprep.mubr.msk.f32.mxu1 %vm3539_vm1, %v3538_v2 }
  0x20   : > { %3029 = vmatpush3.msra.mxu0 %v3716_v27  ;;  %3040 = vmatpush3.msra.mxu1 %v3727_v29 }
  0x21   : > { %3030 = vmatprep.subr.mxu0 %v3538_v2  ;;  %3041 = vmatprep.subr.mxu1 %v3538_v2 }
  0x22   : > { %3031 = vmatpush3.msra.mxu0 %v3721_v28  ;;  %3042 = vmatpush3.msra.mxu1 %v3732_v30 }
  0x23   : > { %3032 = vmatprep.subr.mxu0 %v3538_v2  ;;  %3043 = vmatprep.subr.mxu1 %v3538_v2 }
  0x24   : > { %3033 = vmatpush3.msra.mxu0 %v3738_v31  ;;  %3044 = vmatpush3.msra.mxu1 %v3746_v32 }
  0x25   : > { %3034 = vmatprep.subr.mxu0 %v3538_v2  ;;  %3045 = vmatprep.subr.mxu1 %v3538_v2 }
  0x26   : > { %3035 = vmatpush3.msra.mxu0 %v3752_v33  ;;  %3046 = vmatpush3.msra.mxu1 %v3762_v34 }
  0x27   : > { %3037 = vmatmul.mubr.f32.vlgmr.msra.gmra.mxu0 %v3538_v2  ;;  %3050 = vmatprep.subr.mxu0 %v3538_v2 }
  0x28   : > { %3051 = vmatpush3.msra.mxu0 %v3647_v1  ;;  %3058 = vmatprep.mubr.msk.f32.mxu0 %vm3539_vm1, %v3538_v2 }
  0x29   : > { %3052 = vmatprep.subr.mxu0 %v3538_v2  ;;  %3061 = vmatprep.subr.mxu1 %v3538_v2 }
  0x2a   : > { %3053 = vmatpush3.msra.mxu0 %v3658_v4 }
  0x2b   : > { %3054 = vmatprep.subr.mxu0 %v3538_v2 }
  0x2c   : > { %3055 = vmatpush3.msra.mxu0 %v3670_v6 }
  0x2d   : > { %3056 = vmatprep.subr.mxu0 %v3538_v2 }
  0x2e   : > { %3057 = vmatpush3.msra.mxu0 %v3685_v8 }
  0x2f   : > { %3072 = vmatprep.subr.mxu0 %v3538_v2 }
  0xdd   : > { %v423_v11 = vpop.f32.mrf.mxu0  ;;  %v496_v12 = vpop.f32.mrf.mxu1 }
  0xde   : > { %v3705_v13 = vadd.f32 %v2830_v10, %v423_v11 }
  0xdf   : > { %v3016_v14 = vpop.f32.mrf.mxu0  ;;  %v3027_v15 = vpop.f32.mrf.mxu1 }
  0xe0   : > { %v500_v16 = vadd.f32 %v496_v12, %v3705_v13 }
  0xe2   : > { %3335 = vtanh.f32 %v500_v16  ;;  %v2832_v18 = vmul.f32 -1.442695, %v500_v16 }
  0xe4   : > { %3337 = vpow2.f32 %v2832_v18 }
  0xe7   : > { %v591_v38 = vpop.f32.mrf.mxu0 }
  0xe9   : > { %v3038_v39 = vpop.f32.mrf.mxu0 }
  0xef   : > { %v3336_v17 = vpop.eup %3335 }
  0xf0   : > { %510 = vrot.lane.b32.xlu0 %v3336_v17, %s3540_s17 }
  0xf1   : > { %v3338_v19 = vpop.eup %3337 }
  0xf2   : > { %v504_v20 = vadd.f32 1.0, %v3338_v19 }
  0xf4   : > { %3339 = vrcp.f32 %v504_v20 }
 0x101   : > { %v3340_v21 = vpop.eup %3339 }
 0x102   : > { %v508_v24 = vmul.f32 0.0, %v3340_v21 }
 0x162   : > { %v511_v22 = vpop.permute.xlu0 %510 }
 0x163   : > { %v513_v23 = vmul.f32 %v3340_v21, %v511_v22 }
 0x165   : > { %515 = vrot.lane.b32.xlu0 %v513_v23, %s3541_s21 }
 0x1d7   : > { %v516_v25 = vpop.permute.xlu0 %515 }
 0x1d8   : > { %v3710_v26 = vadd.f32 %v516_v25, %v508_v24 }
 0x1da   : > { %3341 = vtanh.f32 %v3710_v26  ;;  %v777_v0 = vrot.slane %v3710_v26, 7 }
 0x1e7   : > { %v3342_v35 = vpop.eup %3341 }
 0x1e8   : > { %521 = vrot.lane.b32.xlu1 %v3342_v35, %s3540_s17 }
 0x25a   : > { %v522_v36 = vpop.permute.xlu1 %521 }
 0x25b   : > { %v524_v37 = vmul.f32 %v3340_v21, %v522_v36 }
 0x25d   : > { %596 = vrot.lane.b32.xlu1 %v524_v37, %s3541_s21 }
 0x2cf   : > { %v597_v40 = vpop.permute.xlu1 %596 }
 0x2d0   : > { %3048 = vmatmul.mubr.msk.f32.vlgmr.msra.gmra.mxu1 %vm353_vm0, %v597_v40  ;;  %3059 = vmatmul.mubr.msk.f32.vlgmr.msra.gmra.mxu0 %vm353_vm0, %v597_v40 }
 0x2d1   : > { %3062 = vmatpush3.msra.mxu1 %v3716_v27  ;;  %3073 = vmatpush3.msra.mxu0 %v3727_v29 }
 0x2d2   : > { %3063 = vmatprep.subr.mxu1 %v3538_v2  ;;  %3074 = vmatprep.subr.mxu0 %v3538_v2 }
 0x2d3   : > { %3064 = vmatpush3.msra.mxu1 %v3721_v28  ;;  %3075 = vmatpush3.msra.mxu0 %v3732_v30 }
 0x2d4   : > { %3065 = vmatprep.subr.mxu1 %v3538_v2  ;;  %3076 = vmatprep.subr.mxu0 %v3538_v2 }
 0x2d5   : > { %3066 = vmatpush3.msra.mxu1 %v3738_v31  ;;  %3069 = vmatprep.mubr.msk.f32.mxu1 %vm3539_vm1, %v3538_v2 }
 0x2d6   : > { %3067 = vmatprep.subr.mxu1 %v3538_v2  ;;  %3077 = vmatpush3.msra.mxu0 %v3746_v32 }
 0x2d7   : > { %3068 = vmatpush3.msra.mxu1 %v3752_v33  ;;  %3078 = vmatprep.subr.mxu0 %v3538_v2 }
 0x2d8   : > { %3083 = vmatprep.subr.mxu1 %v3538_v2  ;;  %3079 = vmatpush3.msra.mxu0 %v3762_v34 }
 0x2d9   : > { %3080 = vmatprep.mubr.msk.f32.mxu0 %vm3539_vm1, %v3538_v2  ;;  %3094 = vmatprep.subr.mxu0 %v3538_v2 }
 0x390   : > { %v666_v42 = vpop.f32.mrf.mxu1  ;;  %v761_v43 = vpop.f32.mrf.mxu0 }
 0x391   : > { %v667_v44 = vadd.f32 %v666_v42, %v591_v38  ;;  %v766_v45 = vrot.slane %v761_v43, 7 }
 0x392   : > { %v3049_v46 = vpop.f32.mrf.mxu1  ;;  %v3060_v47 = vpop.f32.mrf.mxu0 }
 0x393   : > { %v670_v48 = vadd.f32 %v667_v44, %v3807_v41  ;;  %v768_v49 = vadd.f32 %v766_v45, %v3705_v13 }
 0x395   : > { %3343 = vtanh.f32 %v670_v48  ;;  %v2834_v52 = vmul.f32 -1.442695, %v670_v48  ;;  %v2836_v53 = vmul.f32 -1.442695, %v768_v49 }
 0x396   : > { %3345 = vtanh.f32 %v768_v49 }
 0x397   : > { %3347 = vpow2.f32 %v2834_v52 }
 0x398   : > { %3349 = vpow2.f32 %v2836_v53 }
 0x3a2   : > { %v3344_v50 = vpop.eup %3343 }
 0x3a3   : > { %v3346_v51 = vpop.eup %3345  ;;  %680 = vrot.lane.b32.xlu0 %v3344_v50, %s3540_s17 }
 0x3a4   : > { %781 = vrot.lane.b32.xlu1 %v3346_v51, %s3540_s17  ;;  %v3348_v54 = vpop.eup %3347 }
 0x3a5   : > { %v3350_v55 = vpop.eup %3349  ;;  %v674_v56 = vadd.f32 1.0, %v3348_v54 }
 0x3a6   : > { %v772_v57 = vadd.f32 1.0, %v3350_v55 }
 0x3a7   : > { %3351 = vrcp.f32 %v674_v56 }
 0x3a8   : > { %3353 = vrcp.f32 %v772_v57 }
 0x3b4   : > { %v3352_v58 = vpop.eup %3351 }
 0x3b5   : > { %v3354_v60 = vpop.eup %3353  ;;  %v678_v3 = vmul.f32 0.0, %v3352_v58 }
 0x3b6   : > { %v779_v7 = vmul.f32 %v3354_v60, %v777_v0 }
 0x415   : > { %v681_v59 = vpop.permute.xlu0 %680 }
 0x416   : > { %v683_v61 = vmul.f32 %v3352_v58, %v681_v59  ;;  %v782_v62 = vpop.permute.xlu1 %781 }
 0x417   : > { %v784_v63 = vmul.f32 %v3354_v60, %v782_v62 }
 0x418   : > { %685 = vrot.lane.b32.xlu0 %v683_v61, %s3541_s21 }
 0x419   : > { %786 = vrot.lane.b32.xlu1 %v784_v63, %s3541_s21 }
 0x48a   : > { %v686_v5 = vpop.permute.xlu0 %685 }
 0x48b   : > { %v3816_v9 = vadd.f32 %v686_v5, %v678_v3  ;;  %v787_v10 = vpop.permute.xlu1 %786 }
 0x48c   : > { %v3818_v11 = vadd.f32 %v787_v10, %v779_v7 }
 0x48d   : > { %3355 = vtanh.f32 %v3816_v9 }
 0x48e   : > { %3357 = vtanh.f32 %v3818_v11 }
 0x49a   : > { %v3356_v12 = vpop.eup %3355 }
 0x49b   : > { %v3358_v14 = vpop.eup %3357  ;;  %691 = vrot.lane.b32.xlu0 %v3356_v12, %s3540_s17 }
 0x49c   : > { %792 = vrot.lane.b32.xlu1 %v3358_v14, %s3540_s17 }
 0x50d   : > { %v692_v15 = vpop.permute.xlu0 %691 }
 0x50e   : > { %v3824_v16 = vmul.f32 %v3352_v58, %v692_v15  ;;  %v793_v17 = vpop.permute.xlu1 %792  ;;  %v1054_v58 = vrot.slane %v3818_v11, 7 }
 0x50f   : > { %v795_v18 = vmul.f32 %v3354_v60, %v793_v17 }
 0x510   : > { %797 = vrot.lane.b32.xlu0 %v3824_v16, %s3541_s21 }
 0x511   : > { %v872_v19 = vrot.slane %v795_v18, 1 }
 0x513   : > { %873 = vrot.lane.b32.xlu1 %v872_v19, %s3541_s21 }
 0x582   : > { %v798_v20 = vpop.permute.xlu0 %797 }
 0x583   : > { %3070 = vmatmul.mubr.msk.f32.vlgmr.msra.gmra.mxu1 %vm353_vm0, %v798_v20 }
 0x584   : > { %3084 = vmatpush3.msra.mxu1 %v3647_v1  ;;  %3091 = vmatprep.mubr.msk.f32.mxu1 %vm3539_vm1, %v3538_v2 }
 0x585   : > { %3085 = vmatprep.subr.mxu1 %v3538_v2  ;;  %v874_v21 = vpop.permute.xlu1 %873 }
 0x586   : > { %3081 = vmatmul.mubr.msk.f32.vlgmr.msra.gmra.mxu0 %vm353_vm0, %v874_v21  ;;  %3086 = vmatpush3.msra.mxu1 %v3658_v4 }
 0x587   : > { %3087 = vmatprep.subr.mxu1 %v3538_v2  ;;  %3095 = vmatpush3.msra.mxu0 %v3716_v27 }
 0x588   : > { %3088 = vmatpush3.msra.mxu1 %v3670_v6  ;;  %3096 = vmatprep.subr.mxu0 %v3538_v2 }
 0x589   : > { %3089 = vmatprep.subr.mxu1 %v3538_v2  ;;  %3097 = vmatpush3.msra.mxu0 %v3721_v28 }
 0x58a   : > { %3090 = vmatpush3.msra.mxu1 %v3685_v8  ;;  %3098 = vmatprep.subr.mxu0 %v3538_v2 }
 0x58b   : > { %3092 = vmatmul.mubr.msk.f32.vlgmr.msra.gmra.mxu1 %vm353_vm0, %v874_v21  ;;  %3099 = vmatpush3.msra.mxu0 %v3738_v31 }
 0x58c   : > { %3100 = vmatprep.subr.mxu0 %v3538_v2  ;;  %3102 = vmatprep.mubr.msk.f32.mxu0 %vm3539_vm1, %v3538_v2 }
 0x58d   : > { %3101 = vmatpush3.msra.mxu0 %v3752_v33  ;;  %3105 = vmatprep.subr.mxu1 %v3538_v2 }
 0x58e   : > { %3116 = vmatprep.subr.mxu0 %v3538_v2  ;;  %3106 = vmatpush3.msra.mxu1 %v3727_v29 }
 0x58f   : > { %3107 = vmatprep.subr.mxu1 %v3538_v2  ;;  %3113 = vmatprep.mubr.msk.f32.mxu1 %vm3539_vm1, %v3538_v2 }
 0x590   : > { %3108 = vmatpush3.msra.mxu1 %v3732_v30 }
 0x591   : > { %3109 = vmatprep.subr.mxu1 %v3538_v2 }
 0x592   : > { %3110 = vmatpush3.msra.mxu1 %v3746_v32 }
 0x593   : > { %3111 = vmatprep.subr.mxu1 %v3538_v2 }
 0x594   : > { %3112 = vmatpush3.msra.mxu1 %v3762_v34 }
 0x595   : > { %3127 = vmatprep.subr.mxu1 %v3538_v2 }
 0x643   : > { %v867_v22 = vpop.f32.mrf.mxu1 }
 0x645   : > { %v3071_v23 = vpop.f32.mrf.mxu1 }
 0x646   : > { %v943_v24 = vpop.f32.mrf.mxu0 }
 0x647   : > { %v944_v25 = vadd.f32 %v943_v24, %v867_v22 }
 0x648   : > { %v3082_v26 = vpop.f32.mrf.mxu0 }
 0x649   : > { %v947_v35 = vadd.f32 %v944_v25, %v3807_v41 }
 0x64b   : > { %3359 = vtanh.f32 %v947_v35  ;;  %v1038_v36 = vpop.f32.mrf.mxu1  ;;  %v2839_v43 = vmul.f32 -1.442695, %v947_v35 }
 0x64c   : > { %v1043_v37 = vrot.slane %v1038_v36, 6 }
 0x64d   : > { %v3093_v38 = vpop.f32.mrf.mxu1 }
 0x64e   : > { %v1045_v39 = vadd.f32 %v1043_v37, %v3705_v13 }
 0x650   : > { %3361 = vtanh.f32 %v1045_v39  ;;  %v2841_v44 = vmul.f32 -1.442695, %v1045_v39 }
 0x651   : > { %3363 = vpow2.f32 %v2839_v43 }
 0x652   : > { %3365 = vpow2.f32 %v2841_v44 }
 0x658   : > { %v3360_v40 = vpop.eup %3359 }
 0x659   : > { %957 = vrot.lane.b32.xlu0 %v3360_v40, %s3540_s17 }
 0x65d   : > { %v3362_v42 = vpop.eup %3361 }
 0x65e   : > { %1058 = vrot.lane.b32.xlu1 %v3362_v42, %s3540_s17  ;;  %v3364_v45 = vpop.eup %3363 }
 0x65f   : > { %v951_v46 = vadd.f32 1.0, %v3364_v45  ;;  %v3366_v47 = vpop.eup %3365 }
 0x660   : > { %v1049_v48 = vadd.f32 1.0, %v3366_v47 }
 0x661   : > { %3367 = vrcp.f32 %v951_v46 }
 0x662   : > { %3369 = vrcp.f32 %v1049_v48 }
 0x66e   : > { %v3368_v49 = vpop.eup %3367 }
 0x66f   : > { %v3370_v52 = vpop.eup %3369  ;;  %v955_v55 = vmul.f32 %v3368_v49, %v3816_v9 }
 0x670   : > { %v1056_v59 = vmul.f32 %v3370_v52, %v1054_v58 }
 0x6cb   : > { %v958_v50 = vpop.permute.xlu0 %957 }
 0x6cc   : > { %v960_v51 = vmul.f32 %v3368_v49, %v958_v50 }
 0x6ce   : > { %962 = vrot.lane.b32.xlu0 %v960_v51, %s3541_s21 }
 0x6d0   : > { %v1059_v53 = vpop.permute.xlu1 %1058 }
 0x6d1   : > { %v1061_v54 = vmul.f32 %v3370_v52, %v1059_v53 }
 0x6d3   : > { %1063 = vrot.lane.b32.xlu1 %v1061_v54, %s3541_s21 }
 0x740   : > { %v963_v56 = vpop.permute.xlu0 %962 }
 0x741   : > { %v3869_v57 = vadd.f32 %v963_v56, %v955_v55 }
 0x743   : > { %3371 = vtanh.f32 %v3869_v57 }
 0x745   : > { %v1064_v60 = vpop.permute.xlu1 %1063 }
 0x746   : > { %v3873_v61 = vadd.f32 %v1064_v60, %v1056_v59 }
 0x748   : > { %3373 = vtanh.f32 %v3873_v61  ;;  %v1331_v47 = vrot.slane %v3873_v61, 7 }
 0x750   : > { %v3372_v62 = vpop.eup %3371 }
 0x751   : > { %968 = vrot.lane.b32.xlu0 %v3372_v62, %s3540_s17 }
 0x755   : > { %v3374_v63 = vpop.eup %3373 }
 0x756   : > { %1069 = vrot.lane.b32.xlu1 %v3374_v63, %s3540_s17 }
 0x7c3   : > { %v969_v0 = vpop.permute.xlu0 %968 }
 0x7c4   : > { %v3878_v3 = vmul.f32 %v3368_v49, %v969_v0 }
 0x7c6   : > { %1074 = vrot.lane.b32.xlu0 %v3878_v3, %s3541_s21  ;;  %v2634_v56 = vrot.slane %v3878_v3, 7 }
 0x7c8   : > { %v1070_v5 = vpop.permute.xlu1 %1069  ;;  %v2650_v62 = vsel %vm2649_vm2, %v3824_v16, %v2634_v56 }
 0x7c9   : > { %v1072_v7 = vmul.f32 %v3370_v52, %v1070_v5 }
 0x7cb   : > { %v1149_v9 = vrot.slane %v1072_v7, 2 }
 0x7cd   : > { %1150 = vrot.lane.b32.xlu1 %v1149_v9, %s3541_s21 }
 0x838   : > { %v1075_v10 = vpop.permute.xlu0 %1074 }
 0x839   : > { %3103 = vmatmul.mubr.msk.f32.vlgmr.msra.gmra.mxu0 %vm353_vm0, %v1075_v10 }
 0x83a   : > { %3117 = vmatpush3.msra.mxu0 %v3647_v1  ;;  %3124 = vmatprep.mubr.msk.f32.mxu0 %vm3539_vm1, %v3538_v2 }
 0x83b   : > { %3118 = vmatprep.subr.mxu0 %v3538_v2 }
 0x83c   : > { %3119 = vmatpush3.msra.mxu0 %v3658_v4 }
 0x83d   : > { %3120 = vmatprep.subr.mxu0 %v3538_v2 }
 0x83e   : > { %3121 = vmatpush3.msra.mxu0 %v3670_v6 }
 0x83f   : > { %3122 = vmatprep.subr.mxu0 %v3538_v2  ;;  %v1151_v11 = vpop.permute.xlu1 %1150 }
 0x840   : > { %3123 = vmatpush3.msra.mxu0 %v3685_v8  ;;  %3114 = vmatmul.mubr.msk.f32.vlgmr.msra.gmra.mxu1 %vm353_vm0, %v1151_v11 }
 0x841   : > { %3125 = vmatmul.mubr.msk.f32.vlgmr.msra.gmra.mxu0 %vm353_vm0, %v1151_v11  ;;  %3128 = vmatpush3.msra.mxu1 %v3716_v27 }
 0x842   : > { %3129 = vmatprep.subr.mxu1 %v3538_v2  ;;  %3138 = vmatprep.subr.mxu0 %v3538_v2 }
 0x843   : > { %3130 = vmatpush3.msra.mxu1 %v3721_v28  ;;  %3139 = vmatpush3.msra.mxu0 %v3727_v29 }
 0x844   : > { %3131 = vmatprep.subr.mxu1 %v3538_v2  ;;  %3140 = vmatprep.subr.mxu0 %v3538_v2 }
 0x845   : > { %3132 = vmatpush3.msra.mxu1 %v3738_v31  ;;  %3141 = vmatpush3.msra.mxu0 %v3732_v30 }
 0x846   : > { %3133 = vmatprep.subr.mxu1 %v3538_v2  ;;  %3142 = vmatprep.subr.mxu0 %v3538_v2 }
 0x847   : > { %3134 = vmatpush3.msra.mxu1 %v3752_v33  ;;  %3135 = vmatprep.mubr.msk.f32.mxu1 %vm3539_vm1, %v3538_v2 }
 0x848   : > { %3143 = vmatpush3.msra.mxu0 %v3746_v32  ;;  %3149 = vmatprep.subr.mxu1 %v3538_v2 }
 0x849   : > { %3144 = vmatprep.subr.mxu0 %v3538_v2  ;;  %3146 = vmatprep.mubr.msk.f32.mxu0 %vm3539_vm1, %v3538_v2 }
 0x84a   : > { %3145 = vmatpush3.msra.mxu0 %v3762_v34 }
 0x84b   : > { %3160 = vmatprep.subr.mxu0 %v3538_v2 }
 0x8f9   : > { %v1144_v12 = vpop.f32.mrf.mxu0 }
 0x8fb   : > { %v3104_v14 = vpop.f32.mrf.mxu0 }
 0x900   : > { %v1220_v15 = vpop.f32.mrf.mxu1 }
 0x901   : > { %v1221_v17 = vadd.f32 %v1220_v15, %v1144_v12  ;;  %v1315_v18 = vpop.f32.mrf.mxu0 }
 0x902   : > { %v1320_v19 = vrot.slane %v1315_v18, 5  ;;  %v3115_v20 = vpop.f32.mrf.mxu1 }
 0x903   : > { %v1224_v21 = vadd.f32 %v1221_v17, %v3807_v41  ;;  %v3126_v22 = vpop.f32.mrf.mxu0 }
 0x904   : > { %v1322_v23 = vadd.f32 %v1320_v19, %v3705_v13 }
 0x905   : > { %3375 = vtanh.f32 %v1224_v21  ;;  %v2844_v26 = vmul.f32 -1.442695, %v1224_v21 }
 0x906   : > { %3377 = vtanh.f32 %v1322_v23  ;;  %v2846_v35 = vmul.f32 -1.442695, %v1322_v23 }
 0x907   : > { %3379 = vpow2.f32 %v2844_v26 }
 0x908   : > { %3381 = vpow2.f32 %v2846_v35 }
 0x912   : > { %v3376_v24 = vpop.eup %3375 }
 0x913   : > { %v3378_v25 = vpop.eup %3377  ;;  %1234 = vrot.lane.b32.xlu0 %v3376_v24, %s3540_s17 }
 0x914   : > { %1335 = vrot.lane.b32.xlu1 %v3378_v25, %s3540_s17  ;;  %v3380_v36 = vpop.eup %3379 }
 0x915   : > { %v3382_v37 = vpop.eup %3381  ;;  %v1228_v38 = vadd.f32 1.0, %v3380_v36 }
 0x916   : > { %v1326_v39 = vadd.f32 1.0, %v3382_v37 }
 0x917   : > { %3383 = vrcp.f32 %v1228_v38 }
 0x918   : > { %3385 = vrcp.f32 %v1326_v39 }
 0x924   : > { %v3384_v40 = vpop.eup %3383 }
 0x925   : > { %v3386_v43 = vpop.eup %3385  ;;  %v1232_v48 = vmul.f32 %v3384_v40, %v3869_v57 }
 0x926   : > { %v1333_v50 = vmul.f32 %v3386_v43, %v1331_v47 }
 0x985   : > { %v1235_v42 = vpop.permute.xlu0 %1234 }
 0x986   : > { %v1237_v44 = vmul.f32 %v3384_v40, %v1235_v42  ;;  %v1336_v45 = vpop.permute.xlu1 %1335 }
 0x987   : > { %v1338_v46 = vmul.f32 %v3386_v43, %v1336_v45 }
 0x988   : > { %1239 = vrot.lane.b32.xlu0 %v1237_v44, %s3541_s21 }
 0x989   : > { %1340 = vrot.lane.b32.xlu1 %v1338_v46, %s3541_s21 }
 0x9fa   : > { %v1240_v49 = vpop.permute.xlu0 %1239 }
 0x9fb   : > { %v3924_v51 = vadd.f32 %v1240_v49, %v1232_v48  ;;  %v1341_v52 = vpop.permute.xlu1 %1340 }
 0x9fc   : > { %v3926_v53 = vadd.f32 %v1341_v52, %v1333_v50 }
 0x9fd   : > { %3387 = vtanh.f32 %v3924_v51 }
 0x9fe   : > { %3389 = vtanh.f32 %v3926_v53  ;;  %v1608_v45 = vrot.slane %v3926_v53, 7 }
 0xa0a   : > { %v3388_v54 = vpop.eup %3387 }
 0xa0b   : > { %v3390_v55 = vpop.eup %3389  ;;  %1245 = vrot.lane.b32.xlu0 %v3388_v54, %s3540_s17 }
 0xa0c   : > { %1346 = vrot.lane.b32.xlu1 %v3390_v55, %s3540_s17 }
 0xa7d   : > { %v1246_v57 = vpop.permute.xlu0 %1245 }
 0xa7e   : > { %v1248_v58 = vmul.f32 %v3384_v40, %v1246_v57  ;;  %v1347_v59 = vpop.permute.xlu1 %1346 }
 0xa7f   : > { %v1349_v60 = vmul.f32 %v3386_v43, %v1347_v59 }
 0xa80   : > { %v2636_v61 = vrot.slane %v1248_v58, 6  ;;  %1351 = vrot.lane.b32.xlu0 %v1248_v58, %s3541_s21 }
 0xa81   : > { %v1426_v63 = vrot.slane %v1349_v60, 3 }
 0xa82   : > { %v3935_v0 = vsel %vm2651_vm3, %v2650_v62, %v2636_v61 }
 0xa83   : > { %1427 = vrot.lane.b32.xlu1 %v1426_v63, %s3541_s21 }
 0xaf2   : > { %v1352_v5 = vpop.permute.xlu0 %1351 }
 0xaf3   : > { %3136 = vmatmul.mubr.msk.f32.vlgmr.msra.gmra.mxu1 %vm353_vm0, %v1352_v5 }
 0xaf4   : > { %3150 = vmatpush3.msra.mxu1 %v3647_v1  ;;  %3157 = vmatprep.mubr.msk.f32.mxu1 %vm3539_vm1, %v3538_v2 }
 0xaf5   : > { %3151 = vmatprep.subr.mxu1 %v3538_v2  ;;  %v1428_v3 = vpop.permute.xlu1 %1427 }
 0xaf6   : > { %3147 = vmatmul.mubr.msk.f32.vlgmr.msra.gmra.mxu0 %vm353_vm0, %v1428_v3  ;;  %3152 = vmatpush3.msra.mxu1 %v3658_v4 }
 0xaf7   : > { %3153 = vmatprep.subr.mxu1 %v3538_v2  ;;  %3161 = vmatpush3.msra.mxu0 %v3716_v27 }
 0xaf8   : > { %3154 = vmatpush3.msra.mxu1 %v3670_v6  ;;  %3162 = vmatprep.subr.mxu0 %v3538_v2 }
 0xaf9   : > { %3155 = vmatprep.subr.mxu1 %v3538_v2  ;;  %3163 = vmatpush3.msra.mxu0 %v3721_v28 }
 0xafa   : > { %3156 = vmatpush3.msra.mxu1 %v3685_v8  ;;  %3164 = vmatprep.subr.mxu0 %v3538_v2 }
 0xafb   : > { %3158 = vmatmul.mubr.msk.f32.vlgmr.msra.gmra.mxu1 %vm353_vm0, %v1428_v3  ;;  %3165 = vmatpush3.msra.mxu0 %v3738_v31 }
 0xafc   : > { %3166 = vmatprep.subr.mxu0 %v3538_v2  ;;  %3168 = vmatprep.mubr.msk.f32.mxu0 %vm3539_vm1, %v3538_v2 }
 0xafd   : > { %3167 = vmatpush3.msra.mxu0 %v3752_v33  ;;  %3171 = vmatprep.subr.mxu1 %v3538_v2 }
 0xafe   : > { %3182 = vmatprep.subr.mxu0 %v3538_v2  ;;  %3172 = vmatpush3.msra.mxu1 %v3727_v29 }
 0xaff   : > { %3173 = vmatprep.subr.mxu1 %v3538_v2  ;;  %3179 = vmatprep.mubr.msk.f32.mxu1 %vm3539_vm1, %v3538_v2 }
 0xb00   : > { %3174 = vmatpush3.msra.mxu1 %v3732_v30 }
 0xb01   : > { %3175 = vmatprep.subr.mxu1 %v3538_v2 }
 0xb02   : > { %3176 = vmatpush3.msra.mxu1 %v3746_v32 }
 0xb03   : > { %3177 = vmatprep.subr.mxu1 %v3538_v2 }
 0xb04   : > { %3178 = vmatpush3.msra.mxu1 %v3762_v34 }
 0xb05   : > { %3193 = vmatprep.subr.mxu1 %v3538_v2 }
 0xbb3   : > { %v1421_v16 = vpop.f32.mrf.mxu1 }
 0xbb5   : > { %v3137_v7 = vpop.f32.mrf.mxu1 }
 0xbb6   : > { %v1497_v9 = vpop.f32.mrf.mxu0 }
 0xbb7   : > { %v1498_v10 = vadd.f32 %v1497_v9, %v1421_v16 }
 0xbb8   : > { %v3148_v11 = vpop.f32.mrf.mxu0 }
 0xbb9   : > { %v1501_v12 = vadd.f32 %v1498_v10, %v3807_v41 }
 0xbbb   : > { %3391 = vtanh.f32 %v1501_v12  ;;  %v1592_v14 = vpop.f32.mrf.mxu1  ;;  %v2849_v21 = vmul.f32 -1.442695, %v1501_v12 }
 0xbbc   : > { %v1597_v15 = vrot.slane %v1592_v14, 4 }
 0xbbd   : > { %v3159_v17 = vpop.f32.mrf.mxu1 }
 0xbbe   : > { %v1599_v18 = vadd.f32 %v1597_v15, %v3705_v13 }
 0xbc0   : > { %3393 = vtanh.f32 %v1599_v18  ;;  %v2851_v22 = vmul.f32 -1.442695, %v1599_v18 }
 0xbc1   : > { %3395 = vpow2.f32 %v2849_v21 }
 0xbc2   : > { %3397 = vpow2.f32 %v2851_v22 }
 0xbc8   : > { %v3392_v19 = vpop.eup %3391 }
 0xbc9   : > { %1511 = vrot.lane.b32.xlu0 %v3392_v19, %s3540_s17 }
 0xbcd   : > { %v3394_v20 = vpop.eup %3393 }
 0xbce   : > { %1612 = vrot.lane.b32.xlu1 %v3394_v20, %s3540_s17  ;;  %v3396_v23 = vpop.eup %3395 }
 0xbcf   : > { %v1505_v24 = vadd.f32 1.0, %v3396_v23  ;;  %v3398_v25 = vpop.eup %3397 }
 0xbd0   : > { %v1603_v26 = vadd.f32 1.0, %v3398_v25 }
 0xbd1   : > { %3399 = vrcp.f32 %v1505_v24 }
 0xbd2   : > { %3401 = vrcp.f32 %v1603_v26 }
 0xbde   : > { %v3400_v35 = vpop.eup %3399 }
 0xbdf   : > { %v3402_v38 = vpop.eup %3401  ;;  %v1509_v42 = vmul.f32 %v3400_v35, %v3924_v51 }
 0xbe0   : > { %v1610_v46 = vmul.f32 %v3402_v38, %v1608_v45 }
 0xc3b   : > { %v1512_v36 = vpop.permute.xlu0 %1511 }
 0xc3c   : > { %v1514_v37 = vmul.f32 %v3400_v35, %v1512_v36 }
 0xc3e   : > { %1516 = vrot.lane.b32.xlu0 %v1514_v37, %s3541_s21 }
 0xc40   : > { %v1613_v39 = vpop.permute.xlu1 %1612 }
 0xc41   : > { %v1615_v40 = vmul.f32 %v3402_v38, %v1613_v39 }
 0xc43   : > { %1617 = vrot.lane.b32.xlu1 %v1615_v40, %s3541_s21 }
 0xcb0   : > { %v1517_v43 = vpop.permute.xlu0 %1516 }
 0xcb1   : > { %v3978_v44 = vadd.f32 %v1517_v43, %v1509_v42 }
 0xcb3   : > { %3403 = vtanh.f32 %v3978_v44 }
 0xcb5   : > { %v1618_v47 = vpop.permute.xlu1 %1617 }
 0xcb6   : > { %v3982_v48 = vadd.f32 %v1618_v47, %v1610_v46 }
 0xcb8   : > { %3405 = vtanh.f32 %v3982_v48  ;;  %v1885_v22 = vrot.slane %v3982_v48, 7  ;;  %v4050_v48 = vld [vmem:[%s4252_s2 + $0x18] sm:$0xff] }
 0xcc0   : > { %v3404_v49 = vpop.eup %3403 }
 0xcc1   : > { %1522 = vrot.lane.b32.xlu0 %v3404_v49, %s3540_s17 }
 0xcc5   : > { %v3406_v50 = vpop.eup %3405 }
 0xcc6   : > { %1623 = vrot.lane.b32.xlu1 %v3406_v50, %s3540_s17  ;;  %v4060_v50 = vld [vmem:[%s4252_s2 + $0x10] sm:$0xff] }
 0xd33   : > { %v1523_v51 = vpop.permute.xlu0 %1522 }
 0xd34   : > { %v1525_v52 = vmul.f32 %v3400_v35, %v1523_v51  ;;  %v4068_v51 = vld [vmem:[%s4252_s2 + $0x8] sm:$0xff] }
 0xd36   : > { %v2638_v54 = vrot.slane %v1525_v52, 5  ;;  %1628 = vrot.lane.b32.xlu0 %v1525_v52, %s3541_s21  ;;  %v4077_v52 = vld [vmem:[%s4252_s2] sm:$0xff] }
 0xd38   : > { %v3989_v53 = vsel %vm2653_vm4, %v3935_v0, %v2638_v54  ;;  %v1624_v55 = vpop.permute.xlu1 %1623 }
 0xd39   : > { %v1626_v56 = vmul.f32 %v3402_v38, %v1624_v55 }
 0xd3b   : > { %v1703_v57 = vrot.slane %v1626_v56, 4 }
 0xd3d   : > { %1704 = vrot.lane.b32.xlu1 %v1703_v57, %s3541_s21 }
 0xda8   : > { %v1629_v58 = vpop.permute.xlu0 %1628 }
 0xda9   : > { %3169 = vmatmul.mubr.msk.f32.vlgmr.msra.gmra.mxu0 %vm353_vm0, %v1629_v58 }
 0xdaa   : > { %3183 = vmatpush3.msra.mxu0 %v3647_v1  ;;  %3190 = vmatprep.mubr.msk.f32.mxu0 %vm3539_vm1, %v3538_v2 }
 0xdab   : > { %3184 = vmatprep.subr.mxu0 %v3538_v2 }
 0xdac   : > { %3185 = vmatpush3.msra.mxu0 %v3658_v4 }
 0xdad   : > { %3186 = vmatprep.subr.mxu0 %v3538_v2 }
 0xdae   : > { %3187 = vmatpush3.msra.mxu0 %v3670_v6 }
 0xdaf   : > { %3188 = vmatprep.subr.mxu0 %v3538_v2  ;;  %v1705_v59 = vpop.permute.xlu1 %1704 }
 0xdb0   : > { %3189 = vmatpush3.msra.mxu0 %v3685_v8  ;;  %3180 = vmatmul.mubr.msk.f32.vlgmr.msra.gmra.mxu1 %vm353_vm0, %v1705_v59 }
 0xdb1   : > { %3191 = vmatmul.mubr.msk.f32.vlgmr.msra.gmra.mxu0 %vm353_vm0, %v1705_v59  ;;  %3194 = vmatpush3.msra.mxu1 %v3716_v27 }
 0xdb2   : > { %3195 = vmatprep.subr.mxu1 %v3538_v2  ;;  %3204 = vmatprep.subr.mxu0 %v3538_v2 }
 0xdb3   : > { %3196 = vmatpush3.msra.mxu1 %v3721_v28  ;;  %3205 = vmatpush3.msra.mxu0 %v3727_v29 }
 0xdb4   : > { %3197 = vmatprep.subr.mxu1 %v3538_v2  ;;  %3206 = vmatprep.subr.mxu0 %v3538_v2 }
 0xdb5   : > { %3198 = vmatpush3.msra.mxu1 %v3738_v31  ;;  %3207 = vmatpush3.msra.mxu0 %v3732_v30 }
 0xdb6   : > { %3199 = vmatprep.subr.mxu1 %v3538_v2  ;;  %3208 = vmatprep.subr.mxu0 %v3538_v2 }
 0xdb7   : > { %3200 = vmatpush3.msra.mxu1 %v3752_v33  ;;  %3201 = vmatprep.mubr.msk.f32.mxu1 %vm3539_vm1, %v3538_v2 }
 0xdb8   : > { %3209 = vmatpush3.msra.mxu0 %v3746_v32  ;;  %3215 = vmatprep.subr.mxu1 %v3538_v2 }
 0xdb9   : > { %3210 = vmatprep.subr.mxu0 %v3538_v2  ;;  %3212 = vmatprep.mubr.msk.f32.mxu0 %vm3539_vm1, %v3538_v2 }
 0xdba   : > { %3211 = vmatpush3.msra.mxu0 %v3762_v34 }
 0xdbb   : > { %3226 = vmatprep.subr.mxu0 %v3538_v2 }
 0xe69   : > { %v1698_v1 = vpop.f32.mrf.mxu0 }
 0xe6b   : > { %v3170_v4 = vpop.f32.mrf.mxu0 }
 0xe70   : > { %v1774_v6 = vpop.f32.mrf.mxu1 }
 0xe71   : > { %v1775_v8 = vadd.f32 %v1774_v6, %v1698_v1  ;;  %v1869_v60 = vpop.f32.mrf.mxu0 }
 0xe72   : > { %v1874_v61 = vrot.slane %v1869_v60, 3  ;;  %v3181_v62 = vpop.f32.mrf.mxu1 }
 0xe73   : > { %v1778_v63 = vadd.f32 %v1775_v8, %v3807_v41  ;;  %v3192_v0 = vpop.f32.mrf.mxu0 }
 0xe74   : > { %v1876_v5 = vadd.f32 %v1874_v61, %v3705_v13 }
 0xe75   : > { %3407 = vtanh.f32 %v1778_v63  ;;  %v2854_v7 = vmul.f32 -1.442695, %v1778_v63 }
 0xe76   : > { %3409 = vtanh.f32 %v1876_v5  ;;  %v2856_v9 = vmul.f32 -1.442695, %v1876_v5 }
 0xe77   : > { %3411 = vpow2.f32 %v2854_v7 }
 0xe78   : > { %3413 = vpow2.f32 %v2856_v9 }
 0xe82   : > { %v3408_v3 = vpop.eup %3407 }
 0xe83   : > { %v3410_v16 = vpop.eup %3409  ;;  %1788 = vrot.lane.b32.xlu0 %v3408_v3, %s3540_s17 }
 0xe84   : > { %1889 = vrot.lane.b32.xlu1 %v3410_v16, %s3540_s17  ;;  %v3412_v10 = vpop.eup %3411 }
 0xe85   : > { %v3414_v11 = vpop.eup %3413  ;;  %v1782_v12 = vadd.f32 1.0, %v3412_v10 }
 0xe86   : > { %v1880_v14 = vadd.f32 1.0, %v3414_v11 }
 0xe87   : > { %3415 = vrcp.f32 %v1782_v12 }
 0xe88   : > { %3417 = vrcp.f32 %v1880_v14 }
 0xe94   : > { %v3416_v15 = vpop.eup %3415 }
 0xe95   : > { %v3418_v18 = vpop.eup %3417  ;;  %v1786_v23 = vmul.f32 %v3416_v15, %v3978_v44 }
 0xe96   : > { %v1887_v25 = vmul.f32 %v3418_v18, %v1885_v22 }
 0xef5   : > { %v1789_v17 = vpop.permute.xlu0 %1788 }
 0xef6   : > { %v1791_v19 = vmul.f32 %v3416_v15, %v1789_v17  ;;  %v1890_v20 = vpop.permute.xlu1 %1889 }
 0xef7   : > { %v1892_v21 = vmul.f32 %v3418_v18, %v1890_v20 }
 0xef8   : > { %1793 = vrot.lane.b32.xlu0 %v1791_v19, %s3541_s21 }
 0xef9   : > { %1894 = vrot.lane.b32.xlu1 %v1892_v21, %s3541_s21 }
 0xf6a   : > { %v1794_v24 = vpop.permute.xlu0 %1793 }
 0xf6b   : > { %v4033_v26 = vadd.f32 %v1794_v24, %v1786_v23  ;;  %v1895_v35 = vpop.permute.xlu1 %1894  ;;  %v3467_v24 = vld [vmem:[%s4255_s5 + $0x18] sm:$0xff] }
 0xf6c   : > { %v4035_v36 = vadd.f32 %v1895_v35, %v1887_v25  ;;  %v3468_v25 = vld [vmem:[%s4255_s5 + $0x10] sm:$0xff]  ;;  %v3470_v35 = vld [vmem:[%s4255_s5 + $0x8] sm:$0xff] }
 0xf6d   : > { %3419 = vtanh.f32 %v4033_v26 }
 0xf6e   : > { %3421 = vtanh.f32 %v4035_v36  ;;  %v2162_v16 = vrot.slane %v4035_v36, 7  ;;  %v3471_v36 = vld [vmem:[%s4254_s4 + $0x10] sm:$0xff] }
 0xf7a   : > { %v3420_v37 = vpop.eup %3419 }
 0xf7b   : > { %v3422_v38 = vpop.eup %3421  ;;  %1799 = vrot.lane.b32.xlu0 %v3420_v37, %s3540_s17  ;;  %v3472_v37 = vld [vmem:[%s4255_s5] sm:$0xff] }
 0xf7c   : > { %1900 = vrot.lane.b32.xlu1 %v3422_v38, %s3540_s17  ;;  %v3473_v38 = vld [vmem:[%s4254_s4 + $0x8] sm:$0xff] }
 0xfed   : > { %v1800_v39 = vpop.permute.xlu0 %1799 }
 0xfee   : > { %v1802_v40 = vmul.f32 %v3416_v15, %v1800_v39  ;;  %v1901_v42 = vpop.permute.xlu1 %1900  ;;  %v3474_v39 = vld [vmem:[%s4254_s4] sm:$0xff] }
 0xfef   : > { %v1903_v43 = vmul.f32 %v3418_v18, %v1901_v42 }
 0xff0   : > { %v2640_v44 = vrot.slane %v1802_v40, 4  ;;  %1905 = vrot.lane.b32.xlu0 %v1802_v40, %s3541_s21 }
 0xff1   : > { %v1980_v45 = vrot.slane %v1903_v43, 5 }
 0xff2   : > { %v4043_v46 = vsel %vm2655_vm5, %v3989_v53, %v2640_v44 }
 0xff3   : > { %1981 = vrot.lane.b32.xlu1 %v1980_v45, %s3541_s21 }
0x1062   : > { %v1906_v47 = vpop.permute.xlu0 %1905 }
0x1063   : > { %3202 = vmatmul.mubr.msk.f32.vlgmr.msra.gmra.mxu1 %vm353_vm0, %v1906_v47 }
0x1064   : > { %3216 = vmatpush3.msra.mxu1 %v4050_v48  ;;  %3223 = vmatprep.mubr.msk.f32.mxu1 %vm3539_vm1, %v3538_v2 }
0x1065   : > { %3217 = vmatprep.subr.mxu1 %v3538_v2  ;;  %v1982_v49 = vpop.permute.xlu1 %1981 }
0x1066   : > { %3213 = vmatmul.mubr.msk.f32.vlgmr.msra.gmra.mxu0 %vm353_vm0, %v1982_v49  ;;  %3218 = vmatpush3.msra.mxu1 %v4060_v50 }
0x1067   : > { %3219 = vmatprep.subr.mxu1 %v3538_v2  ;;  %3227 = vmatpush3.msra.mxu0 %v3716_v27 }
0x1068   : > { %3220 = vmatpush3.msra.mxu1 %v4068_v51  ;;  %3228 = vmatprep.subr.mxu0 %v3538_v2 }
0x1069   : > { %3221 = vmatprep.subr.mxu1 %v3538_v2  ;;  %3229 = vmatpush3.msra.mxu0 %v3721_v28 }
0x106a   : > { %3222 = vmatpush3.msra.mxu1 %v4077_v52  ;;  %3230 = vmatprep.subr.mxu0 %v3538_v2 }
0x106b   : > { %3224 = vmatmul.mubr.msk.f32.vlgmr.msra.gmra.mxu1 %vm353_vm0, %v1982_v49  ;;  %3231 = vmatpush3.msra.mxu0 %v3738_v31 }
0x106c   : > { %3232 = vmatprep.subr.mxu0 %v3538_v2  ;;  %3234 = vmatprep.mubr.msk.f32.mxu0 %vm3539_vm1, %v3538_v2 }
0x106d   : > { %3233 = vmatpush3.msra.mxu0 %v3752_v33  ;;  %3237 = vmatprep.subr.mxu1 %v3538_v2 }
0x106e   : > { %3248 = vmatprep.subr.mxu0 %v3538_v2  ;;  %3238 = vmatpush3.msra.mxu1 %v3727_v29 }
0x106f   : > { %3239 = vmatprep.subr.mxu1 %v3538_v2  ;;  %3245 = vmatprep.mubr.msk.f32.mxu1 %vm3539_vm1, %v3538_v2 }
0x1070   : > { %3240 = vmatpush3.msra.mxu1 %v3732_v30 }
0x1071   : > { %3241 = vmatprep.subr.mxu1 %v3538_v2 }
0x1072   : > { %3242 = vmatpush3.msra.mxu1 %v3746_v32 }
0x1073   : > { %3243 = vmatprep.subr.mxu1 %v3538_v2 }
0x1074   : > { %3244 = vmatpush3.msra.mxu1 %v3762_v34 }
0x1075   : > { %3259 = vmatprep.subr.mxu1 %v3538_v2 }
0x1123   : > { %v1975_v27 = vpop.f32.mrf.mxu1 }
0x1125   : > { %v3203_v28 = vpop.f32.mrf.mxu1 }
0x1126   : > { %v2051_v29 = vpop.f32.mrf.mxu0 }
0x1127   : > { %v2052_v31 = vadd.f32 %v2051_v29, %v1975_v27 }
0x1128   : > { %v3214_v33 = vpop.f32.mrf.mxu0 }
0x1129   : > { %v2055_v54 = vadd.f32 %v2052_v31, %v3807_v41 }
0x112b   : > { %3423 = vtanh.f32 %v2055_v54  ;;  %v2146_v53 = vpop.f32.mrf.mxu1  ;;  %v2859_v57 = vmul.f32 -1.442695, %v2055_v54 }
0x112c   : > { %v2151_v30 = vrot.slane %v2146_v53, 2 }
0x112d   : > { %v3225_v55 = vpop.f32.mrf.mxu1 }
0x112e   : > { %v2153_v56 = vadd.f32 %v2151_v30, %v3705_v13 }
0x1130   : > { %3425 = vtanh.f32 %v2153_v56  ;;  %v2861_v58 = vmul.f32 -1.442695, %v2153_v56 }
0x1131   : > { %3427 = vpow2.f32 %v2859_v57 }
0x1132   : > { %3429 = vpow2.f32 %v2861_v58 }
0x1138   : > { %v3424_v32 = vpop.eup %3423 }
0x1139   : > { %2065 = vrot.lane.b32.xlu0 %v3424_v32, %s3540_s17 }
0x113d   : > { %v3426_v34 = vpop.eup %3425 }
0x113e   : > { %2166 = vrot.lane.b32.xlu1 %v3426_v34, %s3540_s17  ;;  %v3428_v59 = vpop.eup %3427 }
0x113f   : > { %v2059_v1 = vadd.f32 1.0, %v3428_v59  ;;  %v3430_v41 = vpop.eup %3429 }
0x1140   : > { %v2157_v4 = vadd.f32 1.0, %v3430_v41 }
0x1141   : > { %3431 = vrcp.f32 %v2059_v1 }
0x1142   : > { %3433 = vrcp.f32 %v2157_v4 }
0x114e   : > { %v3432_v6 = vpop.eup %3431 }
0x114f   : > { %v3434_v61 = vpop.eup %3433  ;;  %v2063_v0 = vmul.f32 %v3432_v6, %v4033_v26  ;;  %v3469_v26 = vld [vmem:[%s4254_s4 + $0x18] sm:$0xff] }
0x1150   : > { %v2164_v7 = vmul.f32 %v3434_v61, %v2162_v16 }
0x11ab   : > { %v2066_v8 = vpop.permute.xlu0 %2065 }
0x11ac   : > { %v2068_v60 = vmul.f32 %v3432_v6, %v2066_v8 }
0x11ae   : > { %2070 = vrot.lane.b32.xlu0 %v2068_v60, %s3541_s21 }
0x11b0   : > { %v2167_v62 = vpop.permute.xlu1 %2166 }
0x11b1   : > { %v2169_v63 = vmul.f32 %v3434_v61, %v2167_v62 }
0x11b3   : > { %2171 = vrot.lane.b32.xlu1 %v2169_v63, %s3541_s21 }
0x1220   : > { %v2071_v5 = vpop.permute.xlu0 %2070 }
0x1221   : > { %v4106_v3 = vadd.f32 %v2071_v5, %v2063_v0 }
0x1223   : > { %3435 = vtanh.f32 %v4106_v3 }
0x1225   : > { %v2172_v9 = vpop.permute.xlu1 %2171 }
0x1226   : > { %v4110_v10 = vadd.f32 %v2172_v9, %v2164_v7 }
0x1228   : > { %3437 = vtanh.f32 %v4110_v10  ;;  %v2439_v57 = vrot.slane %v4110_v10, 7 }
0x1230   : > { %v3436_v11 = vpop.eup %3435 }
0x1231   : > { %2076 = vrot.lane.b32.xlu0 %v3436_v11, %s3540_s17 }
0x1235   : > { %v3438_v12 = vpop.eup %3437 }
0x1236   : > { %2177 = vrot.lane.b32.xlu1 %v3438_v12, %s3540_s17 }
0x12a3   : > { %v2077_v14 = vpop.permute.xlu0 %2076 }
0x12a4   : > { %v2079_v15 = vmul.f32 %v3432_v6, %v2077_v14 }
0x12a6   : > { %v2642_v17 = vrot.slane %v2079_v15, 3  ;;  %2182 = vrot.lane.b32.xlu0 %v2079_v15, %s3541_s21 }
0x12a8   : > { %v2178_v18 = vpop.permute.xlu1 %2177  ;;  %v4117_v19 = vsel %vm2657_vm6, %v4043_v46, %v2642_v17 }
0x12a9   : > { %v2180_v20 = vmul.f32 %v3434_v61, %v2178_v18 }
0x12ab   : > { %v2257_v21 = vrot.slane %v2180_v20, 6 }
0x12ad   : > { %2258 = vrot.lane.b32.xlu1 %v2257_v21, %s3541_s21 }
0x1318   : > { %v2183_v22 = vpop.permute.xlu0 %2182 }
0x1319   : > { %3235 = vmatmul.mubr.msk.f32.vlgmr.msra.gmra.mxu0 %vm353_vm0, %v2183_v22 }
0x131a   : > { %3249 = vmatpush3.msra.mxu0 %v4050_v48  ;;  %3256 = vmatprep.mubr.msk.f32.mxu0 %vm3539_vm1, %v3538_v2  ;;  %v3475_v48 = vld [vmem:[%s4256_s6] sm:$0x1] }
0x131b   : > { %3250 = vmatprep.subr.mxu0 %v3538_v2 }
0x131c   : > { %3251 = vmatpush3.msra.mxu0 %v4060_v50 }
0x131d   : > { %3252 = vmatprep.subr.mxu0 %v3538_v2 }
0x131e   : > { %3253 = vmatpush3.msra.mxu0 %v4068_v51 }
0x131f   : > { %3254 = vmatprep.subr.mxu0 %v3538_v2  ;;  %v2259_v23 = vpop.permute.xlu1 %2258 }
0x1320   : > { %3255 = vmatpush3.msra.mxu0 %v4077_v52  ;;  %3246 = vmatmul.mubr.msk.f32.vlgmr.msra.gmra.mxu1 %vm353_vm0, %v2259_v23 }
0x1321   : > { %3257 = vmatmul.mubr.msk.f32.vlgmr.msra.gmra.mxu0 %vm353_vm0, %v2259_v23  ;;  %3260 = vmatpush3.msra.mxu1 %v3467_v24 }
0x1322   : > { %3261 = vmatprep.subr.mxu1 %v3538_v2  ;;  %3270 = vmatprep.subr.mxu0 %v3538_v2 }
0x1323   : > { %3262 = vmatpush3.msra.mxu1 %v3468_v25  ;;  %3271 = vmatpush3.msra.mxu0 %v3469_v26 }
0x1324   : > { %3263 = vmatprep.subr.mxu1 %v3538_v2  ;;  %3272 = vmatprep.subr.mxu0 %v3538_v2 }
0x1325   : > { %3264 = vmatpush3.msra.mxu1 %v3470_v35  ;;  %3273 = vmatpush3.msra.mxu0 %v3471_v36  ;;  %v2666_v36 = vld [vmem:[%s4257_s7 + $0x18] sm:$0xff] }
0x1326   : > { %3265 = vmatprep.subr.mxu1 %v3538_v2  ;;  %3274 = vmatprep.subr.mxu0 %v3538_v2 }
0x1327   : > { %3266 = vmatpush3.msra.mxu1 %v3472_v37  ;;  %3267 = vmatprep.mubr.msk.f32.mxu1 %vm3539_vm1, %v3538_v2  ;;  %v2665_v37 = vld [vmem:[%s4257_s7 + $0x10] sm:$0xff] }
0x1328   : > { %3275 = vmatpush3.msra.mxu0 %v3473_v38  ;;  %3278 = vmatprep.mubr.msk.f32.mxu0 %vm3539_vm1, %v3538_v2  ;;  %v2664_v38 = vld [vmem:[%s4257_s7 + $0x8] sm:$0xff] }
0x1329   : > { %3276 = vmatprep.subr.mxu0 %v3538_v2  ;;  %3281 = vmatprep.subr.mxu1 %v3538_v2 }
0x132a   : > { %3277 = vmatpush3.msra.mxu0 %v3474_v39  ;;  %v2663_v39 = vld [vmem:[%s4257_s7] sm:$0xff] }
0x13d9   : > { %v2252_v40 = vpop.f32.mrf.mxu0 }
0x13db   : > { %v3236_v42 = vpop.f32.mrf.mxu0 }
0x13e0   : > { %v2328_v43 = vpop.f32.mrf.mxu1 }
0x13e1   : > { %v2329_v44 = vadd.f32 %v2328_v43, %v2252_v40  ;;  %v2423_v45 = vpop.f32.mrf.mxu0 }
0x13e2   : > { %v2428_v46 = vrot.slane %v2423_v45, 1  ;;  %v3247_v47 = vpop.f32.mrf.mxu1 }
0x13e3   : > { %v2332_v49 = vadd.f32 %v3475_v48, %v2329_v44  ;;  %v3258_v50 = vpop.f32.mrf.mxu0 }
0x13e4   : > { %v2430_v51 = vadd.f32 %v2428_v46, %v3705_v13 }
0x13e5   : > { %3439 = vtanh.f32 %v2332_v49  ;;  %v2864_v28 = vmul.f32 -1.442695, %v2332_v49 }
0x13e6   : > { %3441 = vtanh.f32 %v2430_v51  ;;  %v2866_v29 = vmul.f32 -1.442695, %v2430_v51 }
0x13e7   : > { %3443 = vpow2.f32 %v2864_v28 }
0x13e8   : > { %3445 = vpow2.f32 %v2866_v29 }
0x13f2   : > { %v3440_v52 = vpop.eup %3439 }
0x13f3   : > { %v3442_v27 = vpop.eup %3441  ;;  %2342 = vrot.lane.b32.xlu1 %v3440_v52, %s3540_s17 }
0x13f4   : > { %2443 = vrot.lane.b32.xlu0 %v3442_v27, %s3540_s17  ;;  %v3444_v31 = vpop.eup %3443 }
0x13f5   : > { %v3446_v33 = vpop.eup %3445  ;;  %v2336_v54 = vadd.f32 1.0, %v3444_v31 }
0x13f6   : > { %v2434_v53 = vadd.f32 1.0, %v3446_v33 }
0x13f7   : > { %3447 = vrcp.f32 %v2336_v54 }
0x13f8   : > { %3449 = vrcp.f32 %v2434_v53 }
0x1404   : > { %v3448_v30 = vpop.eup %3447 }
0x1405   : > { %v3450_v55 = vpop.eup %3449  ;;  %v2340_v58 = vmul.f32 %v3448_v30, %v4106_v3 }
0x1406   : > { %v2441_v1 = vmul.f32 %v3450_v55, %v2439_v57 }
0x1465   : > { %v2343_v13 = vpop.permute.xlu1 %2342 }
0x1466   : > { %v2345_v56 = vmul.f32 %v3448_v30, %v2343_v13  ;;  %v2444_v32 = vpop.permute.xlu0 %2443 }
0x1467   : > { %v2446_v34 = vmul.f32 %v3450_v55, %v2444_v32 }
0x1468   : > { %2347 = vrot.lane.b32.xlu1 %v2345_v56, %s3541_s21 }
0x1469   : > { %2448 = vrot.lane.b32.xlu0 %v2446_v34, %s3541_s21 }
0x14da   : > { %v2348_v59 = vpop.permute.xlu1 %2347 }
0x14db   : > { %v2350_v41 = vadd.f32 %v2348_v59, %v2340_v58  ;;  %v2449_v4 = vpop.permute.xlu0 %2448 }
0x14dc   : > { %v2451_v6 = vadd.f32 %v2449_v4, %v2441_v1 }
0x14dd   : > { %3451 = vtanh.f32 %v2350_v41 }
0x14de   : > { %3453 = vtanh.f32 %v2451_v6 }
0x14ea   : > { %v3452_v8 = vpop.eup %3451 }
0x14eb   : > { %v3454_v60 = vpop.eup %3453  ;;  %2353 = vrot.lane.b32.xlu1 %v3452_v8, %s3540_s17 }
0x14ec   : > { %2454 = vrot.lane.b32.xlu0 %v3454_v60, %s3540_s17 }
0x155d   : > { %v2354_v61 = vpop.permute.xlu1 %2353 }
0x155e   : > { %v2356_v62 = vmul.f32 %v3448_v30, %v2354_v61  ;;  %v2455_v63 = vpop.permute.xlu0 %2454 }
0x155f   : > { %v2457_v0 = vmul.f32 %v3450_v55, %v2455_v63 }
0x1560   : > { %v2644_v5 = vrot.slane %v2356_v62, 2  ;;  %2459 = vrot.lane.b32.xlu0 %v2356_v62, %s3541_s21 }
0x1561   : > { %v2534_v3 = vrot.slane %v2457_v0, 7 }
0x1562   : > { %v2660_v16 = vsel %vm2659_vm7, %v4117_v19, %v2644_v5 }
0x1563   : > { %2535 = vrot.lane.b32.xlu1 %v2534_v3, %s3541_s21 }
0x15d2   : > { %v2460_v7 = vpop.permute.xlu0 %2459 }
0x15d3   : > { %3268 = vmatmul.mubr.msk.f32.vlgmr.msra.gmra.mxu1 %vm353_vm0, %v2460_v7 }
0x15d4   : > { %3289 = vmatprep.mubr.msk.f32.mxu1 %vm3539_vm1, %v3538_v2  ;;  %3282 = vmatpush3.msra.mxu1 %v2666_v36 }
0x15d5   : > { %v2536_v9 = vpop.permute.xlu1 %2535  ;;  %3283 = vmatprep.subr.mxu1 %v3538_v2 }
0x15d6   : > { %3279 = vmatmul.mubr.msk.f32.vlgmr.msra.gmra.mxu0 %vm353_vm0, %v2536_v9  ;;  %3284 = vmatpush3.msra.mxu1 %v2665_v37 }
0x15d7   : > { %3285 = vmatprep.subr.mxu1 %v3538_v2 }
0x15d8   : > { %3286 = vmatpush3.msra.mxu1 %v2664_v38 }
0x15d9   : > { %3287 = vmatprep.subr.mxu1 %v3538_v2  ;;  %v2870_v2 = vld [vmem:[%s4258_s8] ss:$0 sm:$0xff] }
0x15da   : > { %3288 = vmatpush3.msra.mxu1 %v2663_v39 }
0x1693   : > { %v2529_v10 = vpop.f32.mrf.mxu1 }
0x1695   : > { %v3269_v11 = vpop.f32.mrf.mxu1 }
0x1696   : > { %v2605_v12 = vpop.f32.mrf.mxu0 }
0x1697   : > { %v2606_v14 = vadd.f32 %v2605_v12, %v2529_v10 }
0x1698   : > { %v3280_v15 = vpop.f32.mrf.mxu0 }
0x1699   : > { %v2609_v17 = vadd.f32 %v3475_v48, %v2606_v14 }
0x169b   : > { %3455 = vtanh.f32 %v2609_v17  ;;  %v2869_v19 = vmul.f32 -1.442695, %v2609_v17 }
0x169d   : > { %3457 = vpow2.f32 %v2869_v19 }
0x16a8   : > { %v3456_v18 = vpop.eup %3455 }
0x16a9   : > { %2619 = vrot.lane.b32.xlu0 %v3456_v18, %s3540_s17 }
0x16aa   : > { %v3458_v20 = vpop.eup %3457 }
0x16ab   : > { %v2613_v21 = vadd.f32 1.0, %v3458_v20 }
0x16ad   : > { %3459 = vrcp.f32 %v2613_v21 }
0x16ba   : > { %v3460_v22 = vpop.eup %3459 }
0x16bb   : > { %v2617_v25 = vmul.f32 %v3460_v22, %v2350_v41 }
0x171b   : > { %v2620_v23 = vpop.permute.xlu0 %2619 }
0x171c   : > { %v2622_v24 = vmul.f32 %v3460_v22, %v2620_v23 }
0x171e   : > { %2624 = vrot.lane.b32.xlu1 %v2622_v24, %s3541_s21 }
0x1790   : > { %v2625_v26 = vpop.permute.xlu1 %2624 }
0x1791   : > { %v2627_v35 = vadd.f32 %v2625_v26, %v2617_v25 }
0x1793   : > { %3461 = vtanh.f32 %v2627_v35 }
0x17a0   : > { %v3462_v40 = vpop.eup %3461 }
0x17a1   : > { %2630 = vrot.lane.b32.xlu0 %v3462_v40, %s3540_s17  ;;  %s2765_s17 = sshll.u32 %s323_s14, 4  ;;  %s2766_s17 = int_to_ptr.vmem [resolvable:$true] %s2765_s17 }
0x17a2   : > { %s3476_s23 = scalar_lea.vmem %s2766_s17, 128  ;;  %p3483_p0 = scmp.lt.s32.totalorder %s2766_s17, %s3481_s25 }
0x17a3   : > { %p3477_p11 = scmp.ne.s32.totalorder %s2766_s17, %s3476_s23  ;;  %p3484_p1 = scmp.lt.s32.totalorder %s3482_s26, %s3476_s23 }
0x17a5   : > { %p3478_p12 = pnand %p3477_p11, %p3631_p5  ;;  %p3485_p2 = por %p3484_p1, %p3483_p0 }
0x17a7   : > { %p3479_p13 = pneg %p3478_p12 }
0x17a9   : > { %p3486_p3 = pnand %p3485_p2, %p3479_p13 }
0x1813   : > { %v2631_v42 = vpop.permute.xlu0 %2630 }
0x1814   : > { %v2633_v43 = vmul.f32 %v3460_v22, %v2631_v42 }
0x1816   : > { %v2647_v44 = vrot.slane %v2633_v43, 1 }
0x1818   : > { %v2662_v45 = vsel %vm2661_vm8, %v2660_v16, %v2647_v44 }
0x1819   : > { %2675 = vrot.lane.b32.xlu1 %v2662_v45, %s3541_s21  ;;  %s4215_s21 = scalar_lea.hbm %s4259_s9, %s2873_s28 }
0x188b   : > { %v2676_v46 = vpop.permute.xlu1 %2675 }
0x188c   : > { %3290 = vmatmul.mubr.msk.f32.vlgmr.msra.gmra.mxu1 %vm353_vm0, %v2676_v46 }
0x194c   : > { %v2745_v47 = vpop.f32.mrf.mxu1 }
0x194d   : > { %v2746_v48 = vadd.f32 %v2870_v2, %v2745_v47 }
0x194e   : > { %v3291_v49 = vpop.f32.mrf.mxu1 }
0x194f   : > { %2750 = vst.msk [vmem:[%s323_s14] sm:$0xff] %vm2749_vm9, %v2746_v48 }
0x1950   : > { %3489 = shalt.err (!%p3486_p3)
}
0x1951   : > { %s3490_s27 = scalar_lea.hbm %s4215_s21, 128  ;;  %s3494_s14 = scalar_lea.hbm %s4259_s9, 256 }
0x1952   : > { %p3491_p4 = scmp.ne.s32.totalorder %s4215_s21, %s3490_s27  ;;  %p3495_p9 = scmp.lt.s32.totalorder %s4215_s21, %s4259_s9 }
0x1953   : > { %p3496_p10 = scmp.lt.s32.totalorder %s3494_s14, %s3490_s27 }
0x1954   : > { %p3492_p7 = pnand %p3491_p4, %p3631_p5 }
0x1955   : > { %p3497_p11 = por %p3496_p10, %p3495_p9 }
0x1956   : > { %p3493_p8 = pneg %p3492_p7 }
0x1958   : > { %p3498_p12 = pnand %p3497_p11, %p3493_p8 }
0x195a   : > { %3501 = shalt.err (!%p3498_p12)
}
0x195b   : > { %3292 = dma.vmem_to_hbm [thread:$0]  (%p3631_p5), %s2766_s17, 128, %s4215_s21, %s2752_s22  }
0x195c PF: > { %p3298_p13 = scmp.ge.s32.totalorder %s3536_s12, 2  ;;  %s2777_s23 = sand.u32 1, %s3524_s30  }
0x195d   : > { %s2778_s13 = scalar_lea.sflag [#allocation3], %s2777_s23 }
0x195e   : > { %p3295_p0 = pnand %p3298_p13, %p3635_p6 }
0x1960   : > { %p3296_p1 = pneg %p3295_p0 }
0x1962   : > { %3519 = dma.done.wait (%p3296_p1), %s2778_s13, 128  }
0x1963   : > { %3521 = vsyncadd (%p3296_p1), %s2778_s13, 4294967168  ;;  %p19_p2 = scmp.ge.s32.totalorder %s3618_s15, 4   ;;  %s4262_s30 = smov %s3528_s10 }
0x1964   : > { %s4263_s10 = smov %s3532_s11  ;;  %s4264_s11 = smov %s3629_s18 }
0x1965   : > { %s4265_s12 = smov %s3618_s15  ;;  %21 = sbr.rel (!%p19_p2) target bundleno = 3 (0x3), region = 91 }
0x196a   :  { %2783 = vsyncpa [#allocation3], 1 }
0x196b   :  { %2785 = vsyncpa [#allocation3 + $0x1], 1 }

</bundles_post_ra>
